<compile_context>
chip_gen: v6e
topology: v6e:2x2x1
jax: 0.10.0
libtpu: 0.0.40
codegen_flags: <defaults>
</compile_context>

<pallas_src>
import math
import jax
import jax.numpy as jnp
from jax.experimental import pallas as pl
from jax.experimental.pallas import tpu as pltpu

FUSION_DIM = 128
NUM_HEADS = 8
HEAD_DIM = FUSION_DIM // NUM_HEADS  # 16
LN_EPS = 1e-5


# ---------------------------------------------------------------------------
# Fully fused kernel: projections -> stack -> MHA -> out-proj -> residual + LN
# One batch element per grid step; everything fits comfortably in VMEM.
# ---------------------------------------------------------------------------
def _make_fused_kernel(num_modalities, num_heads, head_dim, fusion_dim):
    d = fusion_dim

    def kernel(*refs):
        n_m = num_modalities
        x_refs = refs[0:n_m]                       # each (1, S, Din_m)
        proj_refs = refs[n_m:3 * n_m]              # w0_t, b0, w1_t, b1, ...
        (wqkv_ref, bqkv_ref, wo_ref, bo_ref,
         gamma_ref, beta_ref) = refs[3 * n_m:3 * n_m + 6]
        o_ref = refs[3 * n_m + 6]                  # (1, M*S, D)

        # 1) per-modality Linear projections, stacked along the sequence (sublane) axis.
        #    This reproduces torch.stack(...).view(B, M*S, D) without an HBM round-trip.
        pieces = []
        for m in range(n_m):
            w_t = proj_refs[2 * m][...]            # (Din_m, D)
            b = proj_refs[2 * m + 1][...]          # (1, D)
            pieces.append(
                jnp.dot(x_refs[m][0], w_t, preferred_element_type=jnp.float32) + b
            )
        x = jnp.concatenate(pieces, axis=0)        # (L, D) with L = M*S

        # 2) fused QKV projection: one (L,128)@(128,384) MXU pass.
        #    1/sqrt(head_dim) is already folded into the Q weights & bias.
        qkv = jnp.dot(x, wqkv_ref[...], preferred_element_type=jnp.float32) + bqkv_ref[...]
        q = qkv[:, 0 * d:1 * d]
        k = qkv[:, 1 * d:2 * d]
        v = qkv[:, 2 * d:3 * d]

        # 3) multi-head self-attention via full-lane-width head masks.
        #    s_h = q @ (k * mask_h)^T only sums head-h feature lanes, and
        #    p_h @ (v * mask_h) writes only head-h output lanes, so summing over
        #    heads assembles the concatenated multi-head output with no 16-lane
        #    slices, no reshapes and no lane-axis concatenation.
        lane = jax.lax.broadcasted_iota(jnp.int32, (1, d), 1)
        attn = None
        for h in range(num_heads):
            lo = h * head_dim
            hi = lo + head_dim
            m_h = jnp.where((lane >= lo) & (lane < hi), 1.0, 0.0)   # (1, D)
            k_h = k * m_h
            v_h = v * m_h
            s = jax.lax.dot_general(
                q, k_h, (((1,), (1,)), ((), ())),
                preferred_element_type=jnp.float32,
            )                                                        # (L, L)
            s = s - jnp.max(s, axis=-1, keepdims=True)
            p = jnp.exp(s)
            p = p * pl.reciprocal(jnp.sum(p, axis=-1, keepdims=True), approx=True)
            o_h = jnp.dot(p, v_h, preferred_element_type=jnp.float32)  # head-h lanes only
            attn = o_h if attn is None else attn + o_h

        # 4) output projection + residual + LayerNorm (biased variance, eps=1e-5).
        attn = jnp.dot(attn, wo_ref[...], preferred_element_type=jnp.float32) + bo_ref[...]
        y = attn + x
        mean = jnp.mean(y, axis=-1, keepdims=True)
        var = jnp.mean((y - mean) ** 2, axis=-1, keepdims=True)
        y = (y - mean) * jax.lax.rsqrt(var + LN_EPS)
        o_ref[0] = y * gamma_ref[...] + beta_ref[...]

    return kernel


def multimodal_fusion_forward(modality_outputs, prepped):
    """modality_outputs: dict name -> (B, S, Din_m). Returns (B, M*S, FUSION_DIM)."""
    names = list(modality_outputs.keys())
    xs = [modality_outputs[n] for n in names]
    b_sz, seq_l, _ = xs[0].shape
    n_mod = len(names)
    d = FUSION_DIM
    total_l = n_mod * seq_l

    args = []
    in_specs = []
    # modality activations: blocked over batch
    for x in xs:
        din = x.shape[-1]
        args.append(x)
        in_specs.append(pl.BlockSpec((1, seq_l, din), lambda b: (b, 0, 0)))
    # per-modality pre-transposed projection weights + biases (resident, full blocks)
    for n in names:
        w_t, b2 = prepped["proj_t"][n]
        args += [w_t, b2]
        in_specs += [
            pl.BlockSpec((w_t.shape[0], d), lambda b: (0, 0)),
            pl.BlockSpec((1, d), lambda b: (0, 0)),
        ]
    # attention / LN parameters (already transposed / fused / scaled at prep time)
    args += [prepped["wqkv_t"], prepped["bqkv"], prepped["wo_t"], prepped["bo"],
             prepped["ln_gamma"], prepped["ln_beta"]]
    in_specs += [
        pl.BlockSpec((d, 3 * d), lambda b: (0, 0)),
        pl.BlockSpec((1, 3 * d), lambda b: (0, 0)),
        pl.BlockSpec((d, d), lambda b: (0, 0)),
        pl.BlockSpec((1, d), lambda b: (0, 0)),
        pl.BlockSpec((1, d), lambda b: (0, 0)),
        pl.BlockSpec((1, d), lambda b: (0, 0)),
    ]

    kernel = _make_fused_kernel(n_mod, NUM_HEADS, HEAD_DIM, d)
    return pl.pallas_call(
        kernel,
        out_shape=jax.ShapeDtypeStruct((b_sz, total_l, d), jnp.float32),
        grid=(b_sz,),
        in_specs=in_specs,
        out_specs=pl.BlockSpec((1, total_l, d), lambda b: (b, 0, 0)),
        compiler_params=pltpu.CompilerParams(
            dimension_semantics=("parallel",)),  # uses both TCs on v7x; ~free on v5e/v6e
    )(*args)


# ---------------------------------------------------------------------------
# Parameters: raw (PyTorch-shaped) init + one-time preprocessing for the kernel
# ---------------------------------------------------------------------------
def init_params(key, modality_dims, fusion_dim):
    params = {"projections": {}}
    for modality, dim in modality_dims.items():
        key, kw, kb = jax.random.split(key, 3)
        w = 0.02 * jax.random.normal(kw, (fusion_dim, dim), jnp.float32)
        b = 0.01 * jax.random.normal(kb, (fusion_dim,), jnp.float32)
        params["projections"][modality] = (w, b)

    key, k1, k2, k3, k4 = jax.random.split(key, 5)
    params["in_proj_w"] = 0.02 * jax.random.normal(k1, (3 * fusion_dim, fusion_dim), jnp.float32)
    params["in_proj_b"] = 0.01 * jax.random.normal(k2, (3 * fusion_dim,), jnp.float32)
    params["out_proj_w"] = 0.02 * jax.random.normal(k3, (fusion_dim, fusion_dim), jnp.float32)
    params["out_proj_b"] = 0.01 * jax.random.normal(k4, (fusion_dim,), jnp.float32)
    params["ln_gamma"] = jnp.ones((fusion_dim,), jnp.float32)
    params["ln_beta"] = jnp.zeros((fusion_dim,), jnp.float32)
    return params


def prepare_params(raw):
    """Pre-transpose / pre-slice / pre-scale once, off the forward critical path."""
    d = FUSION_DIM
    scale = 1.0 / math.sqrt(HEAD_DIM)
    prepped = {"proj_t": {}}
    for name, (w, b) in raw["projections"].items():
        prepped["proj_t"][name] = (jnp.asarray(w).T, jnp.asarray(b).reshape(1, d))
    wq = raw["in_proj_w"][0 * d:1 * d] * scale   # fold softmax scale into Q
    wk = raw["in_proj_w"][1 * d:2 * d]
    wv = raw["in_proj_w"][2 * d:3 * d]
    bq = raw["in_proj_b"][0 * d:1 * d] * scale
    bk = raw["in_proj_b"][1 * d:2 * d]
    bv = raw["in_proj_b"][2 * d:3 * d]
    prepped["wqkv_t"] = jnp.concatenate([wq.T, wk.T, wv.T], axis=1)      # (D, 3D)
    prepped["bqkv"] = jnp.concatenate([bq, bk, bv]).reshape(1, 3 * d)    # (1, 3D)
    prepped["wo_t"] = raw["out_proj_w"].T
    prepped["bo"] = raw["out_proj_b"].reshape(1, d)
    prepped["ln_gamma"] = raw["ln_gamma"].reshape(1, d)
    prepped["ln_beta"] = raw["ln_beta"].reshape(1, d)
    return jax.tree_util.tree_map(jnp.asarray, prepped)


# ---------------------------------------------------------------------------
# Pure-JAX reference (mirrors the PyTorch module) for a correctness check
# ---------------------------------------------------------------------------
def reference_forward(modality_outputs, raw):
    d = FUSION_DIM
    projected = []
    for name, x in modality_outputs.items():
        w, b = raw["projections"][name]
        projected.append(jnp.einsum("bsd,fd->bsf", x, w) + b)
    stacked = jnp.stack(projected, axis=1)
    b_sz, n_mod, seq_l, _ = stacked.shape
    x = stacked.reshape(b_sz, n_mod * seq_l, d)
    wq, wk, wv = raw["in_proj_w"][:d], raw["in_proj_w"][d:2 * d], raw["in_proj_w"][2 * d:]
    bq, bk, bv = raw["in_proj_b"][:d], raw["in_proj_b"][d:2 * d], raw["in_proj_b"][2 * d:]
    q = x @ wq.T + bq
    k = x @ wk.T + bk
    v = x @ wv.T + bv
    L = n_mod * seq_l
    qh = q.reshape(b_sz, L, NUM_HEADS, HEAD_DIM).transpose(0, 2, 1, 3)
    kh = k.reshape(b_sz, L, NUM_HEADS, HEAD_DIM).transpose(0, 2, 1, 3)
    vh = v.reshape(b_sz, L, NUM_HEADS, HEAD_DIM).transpose(0, 2, 1, 3)
    s = jnp.einsum("bhqd,bhkd->bhqk", qh, kh) / math.sqrt(HEAD_DIM)
    p = jax.nn.softmax(s, axis=-1)
    o = jnp.einsum("bhqk,bhkd->bhqd", p, vh).transpose(0, 2, 1, 3).reshape(b_sz, L, d)
    o = o @ raw["out_proj_w"].T + raw["out_proj_b"]
    y = o + x
    mean = y.mean(-1, keepdims=True)
    var = ((y - mean) ** 2).mean(-1, keepdims=True)
    y = (y - mean) / jnp.sqrt(var + LN_EPS)
    return y * raw["ln_gamma"] + raw["ln_beta"]


if __name__ == "__main__":
    batch, seq = 2, 8
    modality_dims = {"text": 48, "image": 64, "audio": 32}

    key = jax.random.PRNGKey(0)
    raw_params = init_params(key, modality_dims, FUSION_DIM)
    prepped = prepare_params(raw_params)

    modality_outputs = {}
    for i, (modality, dim) in enumerate(modality_dims.items()):
        k = jax.random.fold_in(jax.random.PRNGKey(0), i + 1)
        modality_outputs[modality] = jax.random.normal(k, (batch, seq, dim), jnp.float32)

    fused = multimodal_fusion_forward(modality_outputs, prepped)
    fused = jax.block_until_ready(fused)

    expected_shape = (batch, len(modality_dims) * seq, FUSION_DIM)
    assert fused.shape == expected_shape, (fused.shape, expected_shape)
    assert bool(jnp.all(jnp.isfinite(fused)))

    ref = reference_forward(modality_outputs, raw_params)
    max_err = float(jnp.max(jnp.abs(fused - ref)))
    assert max_err < 1e-2, f"max abs error vs reference: {max_err}"

    print("KERNEL_OK")
</pallas_src>

<mosaic_0001>
module attributes {stable_mosaic.version = 11 : i64} {
  func.func @kernel(%arg0: i32, %arg1: memref<1x8x48xf32, #tpu.memory_space<vmem>>, %arg2: memref<1x8x64xf32, #tpu.memory_space<vmem>>, %arg3: memref<1x8x32xf32, #tpu.memory_space<vmem>>, %arg4: memref<48x128xf32, #tpu.memory_space<vmem>>, %arg5: memref<1x128xf32, #tpu.memory_space<vmem>>, %arg6: memref<64x128xf32, #tpu.memory_space<vmem>>, %arg7: memref<1x128xf32, #tpu.memory_space<vmem>>, %arg8: memref<32x128xf32, #tpu.memory_space<vmem>>, %arg9: memref<1x128xf32, #tpu.memory_space<vmem>>, %arg10: memref<128x384xf32, #tpu.memory_space<vmem>>, %arg11: memref<1x384xf32, #tpu.memory_space<vmem>>, %arg12: memref<128x128xf32, #tpu.memory_space<vmem>>, %arg13: memref<1x128xf32, #tpu.memory_space<vmem>>, %arg14: memref<1x128xf32, #tpu.memory_space<vmem>>, %arg15: memref<1x128xf32, #tpu.memory_space<vmem>>, %arg16: memref<1x24x128xf32, #tpu.memory_space<vmem>>) attributes {dimension_semantics = [#tpu.dimension_semantics<parallel>], iteration_bounds = array<i64: 2>, scalar_prefetch = 0 : i64, scratch_operands = 0 : i64, tpu.core_type = #tpu.core_type<tc>, window_params = [{transform_indices = @transform_0, window_bounds = array<i64: 1, 8, 48>}, {transform_indices = @transform_1, window_bounds = array<i64: 1, 8, 64>}, {transform_indices = @transform_2, window_bounds = array<i64: 1, 8, 32>}, {pipeline_mode = #tpu.pipeline_mode<synchronous>, transform_indices = @transform_3, window_bounds = array<i64: 48, 128>}, {pipeline_mode = #tpu.pipeline_mode<synchronous>, transform_indices = @transform_4, window_bounds = array<i64: 1, 128>}, {pipeline_mode = #tpu.pipeline_mode<synchronous>, transform_indices = @transform_5, window_bounds = array<i64: 64, 128>}, {pipeline_mode = #tpu.pipeline_mode<synchronous>, transform_indices = @transform_6, window_bounds = array<i64: 1, 128>}, {pipeline_mode = #tpu.pipeline_mode<synchronous>, transform_indices = @transform_7, window_bounds = array<i64: 32, 128>}, {pipeline_mode = #tpu.pipeline_mode<synchronous>, transform_indices = @transform_8, window_bounds = array<i64: 1, 128>}, {pipeline_mode = #tpu.pipeline_mode<synchronous>, transform_indices = @transform_9, window_bounds = array<i64: 128, 384>}, {pipeline_mode = #tpu.pipeline_mode<synchronous>, transform_indices = @transform_10, window_bounds = array<i64: 1, 384>}, {pipeline_mode = #tpu.pipeline_mode<synchronous>, transform_indices = @transform_11, window_bounds = array<i64: 128, 128>}, {pipeline_mode = #tpu.pipeline_mode<synchronous>, transform_indices = @transform_12, window_bounds = array<i64: 1, 128>}, {pipeline_mode = #tpu.pipeline_mode<synchronous>, transform_indices = @transform_13, window_bounds = array<i64: 1, 128>}, {pipeline_mode = #tpu.pipeline_mode<synchronous>, transform_indices = @transform_14, window_bounds = array<i64: 1, 128>}, {transform_indices = @transform_15, window_bounds = array<i64: 1, 24, 128>}]} {
    %c0 = arith.constant 0 : index
    %c0_0 = arith.constant 0 : index
    %0 = vector.load %arg4[%c0, %c0_0] : memref<48x128xf32, #tpu.memory_space<vmem>>, vector<48x128xf32>
    %c0_1 = arith.constant 0 : index
    %c0_2 = arith.constant 0 : index
    %1 = vector.load %arg5[%c0_1, %c0_2] : memref<1x128xf32, #tpu.memory_space<vmem>>, vector<1x128xf32>
    %c0_3 = arith.constant 0 : index
    %c0_4 = arith.constant 0 : index
    %c0_5 = arith.constant 0 : index
    %2 = vector.load %arg1[%c0_3, %c0_4, %c0_5] : memref<1x8x48xf32, #tpu.memory_space<vmem>>, vector<1x8x48xf32>
    %3 = vector.shape_cast %2 : vector<1x8x48xf32> to vector<8x48xf32>
    %cst = arith.constant dense<0.000000e+00> : vector<8x128xf32>
    %4 = tpu.matmul %3, %0, %cst {dimension_numbers = #tpu.dot_dimension_numbers<[1], [0], [0], [1], [0, 0, 1, 1], [], []>} : vector<8x48xf32>, vector<48x128xf32>, vector<8x128xf32> -> vector<8x128xf32>
    %5 = vector.broadcast %1 : vector<1x128xf32> to vector<8x128xf32>
    %6 = arith.addf %4, %5 : vector<8x128xf32>
    %c0_6 = arith.constant 0 : index
    %c0_7 = arith.constant 0 : index
    %7 = vector.load %arg6[%c0_6, %c0_7] : memref<64x128xf32, #tpu.memory_space<vmem>>, vector<64x128xf32>
    %c0_8 = arith.constant 0 : index
    %c0_9 = arith.constant 0 : index
    %8 = vector.load %arg7[%c0_8, %c0_9] : memref<1x128xf32, #tpu.memory_space<vmem>>, vector<1x128xf32>
    %c0_10 = arith.constant 0 : index
    %c0_11 = arith.constant 0 : index
    %c0_12 = arith.constant 0 : index
    %9 = vector.load %arg2[%c0_10, %c0_11, %c0_12] : memref<1x8x64xf32, #tpu.memory_space<vmem>>, vector<1x8x64xf32>
    %10 = vector.shape_cast %9 : vector<1x8x64xf32> to vector<8x64xf32>
    %cst_13 = arith.constant dense<0.000000e+00> : vector<8x128xf32>
    %11 = tpu.matmul %10, %7, %cst_13 {dimension_numbers = #tpu.dot_dimension_numbers<[1], [0], [0], [1], [0, 0, 1, 1], [], []>} : vector<8x64xf32>, vector<64x128xf32>, vector<8x128xf32> -> vector<8x128xf32>
    %12 = vector.broadcast %8 : vector<1x128xf32> to vector<8x128xf32>
    %13 = arith.addf %11, %12 : vector<8x128xf32>
    %c0_14 = arith.constant 0 : index
    %c0_15 = arith.constant 0 : index
    %14 = vector.load %arg8[%c0_14, %c0_15] : memref<32x128xf32, #tpu.memory_space<vmem>>, vector<32x128xf32>
    %c0_16 = arith.constant 0 : index
    %c0_17 = arith.constant 0 : index
    %15 = vector.load %arg9[%c0_16, %c0_17] : memref<1x128xf32, #tpu.memory_space<vmem>>, vector<1x128xf32>
    %c0_18 = arith.constant 0 : index
    %c0_19 = arith.constant 0 : index
    %c0_20 = arith.constant 0 : index
    %16 = vector.load %arg3[%c0_18, %c0_19, %c0_20] : memref<1x8x32xf32, #tpu.memory_space<vmem>>, vector<1x8x32xf32>
    %17 = vector.shape_cast %16 : vector<1x8x32xf32> to vector<8x32xf32>
    %cst_21 = arith.constant dense<0.000000e+00> : vector<8x128xf32>
    %18 = tpu.matmul %17, %14, %cst_21 {dimension_numbers = #tpu.dot_dimension_numbers<[1], [0], [0], [1], [0, 0, 1, 1], [], []>} : vector<8x32xf32>, vector<32x128xf32>, vector<8x128xf32> -> vector<8x128xf32>
    %19 = vector.broadcast %15 : vector<1x128xf32> to vector<8x128xf32>
    %20 = arith.addf %18, %19 : vector<8x128xf32>
    %21 = tpu.concatenate %6, %13, %20 in 0 : vector<8x128xf32>, vector<8x128xf32>, vector<8x128xf32> -> vector<24x128xf32>
    %c0_22 = arith.constant 0 : index
    %c0_23 = arith.constant 0 : index
    %22 = vector.load %arg10[%c0_22, %c0_23] : memref<128x384xf32, #tpu.memory_space<vmem>>, vector<128x384xf32>
    %cst_24 = arith.constant dense<0.000000e+00> : vector<24x384xf32>
    %23 = tpu.matmul %21, %22, %cst_24 {dimension_numbers = #tpu.dot_dimension_numbers<[1], [0], [0], [1], [0, 0, 1, 1], [], []>} : vector<24x128xf32>, vector<128x384xf32>, vector<24x384xf32> -> vector<24x384xf32>
    %c0_25 = arith.constant 0 : index
    %c0_26 = arith.constant 0 : index
    %24 = vector.load %arg11[%c0_25, %c0_26] : memref<1x384xf32, #tpu.memory_space<vmem>>, vector<1x384xf32>
    %25 = vector.broadcast %24 : vector<1x384xf32> to vector<24x384xf32>
    %26 = arith.addf %23, %25 : vector<24x384xf32>
    %27 = vector.extract_strided_slice %26 {offsets = [0, 0], sizes = [24, 128], strides = [1, 1]} : vector<24x384xf32> to vector<24x128xf32>
    %28 = vector.extract_strided_slice %26 {offsets = [0, 128], sizes = [24, 128], strides = [1, 1]} : vector<24x384xf32> to vector<24x128xf32>
    %29 = vector.extract_strided_slice %26 {offsets = [0, 256], sizes = [24, 128], strides = [1, 1]} : vector<24x384xf32> to vector<24x128xf32>
    %30 = tpu.iota {dimensions = array<i32: 1>} : vector<1x128xi32>
    %c0_i32 = arith.constant 0 : i32
    %31 = vector.broadcast %c0_i32 : i32 to vector<1x128xi32>
    %32 = arith.cmpi sge, %30, %31 : vector<1x128xi32>
    %c16_i32 = arith.constant 16 : i32
    %33 = vector.broadcast %c16_i32 : i32 to vector<1x128xi32>
    %34 = arith.cmpi slt, %30, %33 : vector<1x128xi32>
    %35 = arith.andi %32, %34 : vector<1x128xi1>
    %cst_27 = arith.constant 1.000000e+00 : f32
    %cst_28 = arith.constant 0.000000e+00 : f32
    %36 = vector.broadcast %cst_27 : f32 to vector<1x128xf32>
    %37 = vector.broadcast %cst_28 : f32 to vector<1x128xf32>
    %38 = arith.select %35, %36, %37 : vector<1x128xi1>, vector<1x128xf32>
    %39 = vector.broadcast %38 : vector<1x128xf32> to vector<24x128xf32>
    %40 = arith.mulf %28, %39 : vector<24x128xf32>
    %41 = vector.broadcast %38 : vector<1x128xf32> to vector<24x128xf32>
    %42 = arith.mulf %29, %41 : vector<24x128xf32>
    %cst_29 = arith.constant dense<0.000000e+00> : vector<24x24xf32>
    %43 = tpu.matmul %27, %40, %cst_29 {dimension_numbers = #tpu.dot_dimension_numbers<[1], [1], [0], [0], [0, 0, 1, 0], [], []>} : vector<24x128xf32>, vector<24x128xf32>, vector<24x24xf32> -> vector<24x24xf32>
    %cst_30 = arith.constant dense<0xFF800000> : vector<24xf32>
    %44 = vector.multi_reduction <maximumf>, %43, %cst_30 [1] : vector<24x24xf32> to vector<24xf32>
    %45 = vector.shape_cast %44 : vector<24xf32> to vector<24x1xf32>
    %46 = vector.broadcast %45 : vector<24x1xf32> to vector<24x24xf32>
    %47 = arith.subf %43, %46 : vector<24x24xf32>
    %48 = math.exp %47 : vector<24x24xf32>
    %cst_31 = arith.constant dense<0.000000e+00> : vector<24xf32>
    %49 = vector.multi_reduction <add>, %48, %cst_31 [1] : vector<24x24xf32> to vector<24xf32>
    %50 = vector.shape_cast %49 : vector<24xf32> to vector<24x1xf32>
    %51 = tpu.reciprocal %50 {approx = true} : vector<24x1xf32> -> vector<24x1xf32>
    %52 = vector.broadcast %51 : vector<24x1xf32> to vector<24x24xf32>
    %53 = arith.mulf %48, %52 : vector<24x24xf32>
    %cst_32 = arith.constant dense<0.000000e+00> : vector<24x128xf32>
    %54 = tpu.matmul %53, %42, %cst_32 {dimension_numbers = #tpu.dot_dimension_numbers<[1], [0], [0], [1], [0, 0, 1, 1], [], []>} : vector<24x24xf32>, vector<24x128xf32>, vector<24x128xf32> -> vector<24x128xf32>
    %c16_i32_33 = arith.constant 16 : i32
    %55 = vector.broadcast %c16_i32_33 : i32 to vector<1x128xi32>
    %56 = arith.cmpi sge, %30, %55 : vector<1x128xi32>
    %c32_i32 = arith.constant 32 : i32
    %57 = vector.broadcast %c32_i32 : i32 to vector<1x128xi32>
    %58 = arith.cmpi slt, %30, %57 : vector<1x128xi32>
    %59 = arith.andi %56, %58 : vector<1x128xi1>
    %cst_34 = arith.constant 1.000000e+00 : f32
    %cst_35 = arith.constant 0.000000e+00 : f32
    %60 = vector.broadcast %cst_34 : f32 to vector<1x128xf32>
    %61 = vector.broadcast %cst_35 : f32 to vector<1x128xf32>
    %62 = arith.select %59, %60, %61 : vector<1x128xi1>, vector<1x128xf32>
    %63 = vector.broadcast %62 : vector<1x128xf32> to vector<24x128xf32>
    %64 = arith.mulf %28, %63 : vector<24x128xf32>
    %65 = vector.broadcast %62 : vector<1x128xf32> to vector<24x128xf32>
    %66 = arith.mulf %29, %65 : vector<24x128xf32>
    %cst_36 = arith.constant dense<0.000000e+00> : vector<24x24xf32>
    %67 = tpu.matmul %27, %64, %cst_36 {dimension_numbers = #tpu.dot_dimension_numbers<[1], [1], [0], [0], [0, 0, 1, 0], [], []>} : vector<24x128xf32>, vector<24x128xf32>, vector<24x24xf32> -> vector<24x24xf32>
    %cst_37 = arith.constant dense<0xFF800000> : vector<24xf32>
    %68 = vector.multi_reduction <maximumf>, %67, %cst_37 [1] : vector<24x24xf32> to vector<24xf32>
    %69 = vector.shape_cast %68 : vector<24xf32> to vector<24x1xf32>
    %70 = vector.broadcast %69 : vector<24x1xf32> to vector<24x24xf32>
    %71 = arith.subf %67, %70 : vector<24x24xf32>
    %72 = math.exp %71 : vector<24x24xf32>
    %cst_38 = arith.constant dense<0.000000e+00> : vector<24xf32>
    %73 = vector.multi_reduction <add>, %72, %cst_38 [1] : vector<24x24xf32> to vector<24xf32>
    %74 = vector.shape_cast %73 : vector<24xf32> to vector<24x1xf32>
    %75 = tpu.reciprocal %74 {approx = true} : vector<24x1xf32> -> vector<24x1xf32>
    %76 = vector.broadcast %75 : vector<24x1xf32> to vector<24x24xf32>
    %77 = arith.mulf %72, %76 : vector<24x24xf32>
    %cst_39 = arith.constant dense<0.000000e+00> : vector<24x128xf32>
    %78 = tpu.matmul %77, %66, %cst_39 {dimension_numbers = #tpu.dot_dimension_numbers<[1], [0], [0], [1], [0, 0, 1, 1], [], []>} : vector<24x24xf32>, vector<24x128xf32>, vector<24x128xf32> -> vector<24x128xf32>
    %79 = arith.addf %54, %78 : vector<24x128xf32>
    %c32_i32_40 = arith.constant 32 : i32
    %80 = vector.broadcast %c32_i32_40 : i32 to vector<1x128xi32>
    %81 = arith.cmpi sge, %30, %80 : vector<1x128xi32>
    %c48_i32 = arith.constant 48 : i32
    %82 = vector.broadcast %c48_i32 : i32 to vector<1x128xi32>
    %83 = arith.cmpi slt, %30, %82 : vector<1x128xi32>
    %84 = arith.andi %81, %83 : vector<1x128xi1>
    %cst_41 = arith.constant 1.000000e+00 : f32
    %cst_42 = arith.constant 0.000000e+00 : f32
    %85 = vector.broadcast %cst_41 : f32 to vector<1x128xf32>
    %86 = vector.broadcast %cst_42 : f32 to vector<1x128xf32>
    %87 = arith.select %84, %85, %86 : vector<1x128xi1>, vector<1x128xf32>
    %88 = vector.broadcast %87 : vector<1x128xf32> to vector<24x128xf32>
    %89 = arith.mulf %28, %88 : vector<24x128xf32>
    %90 = vector.broadcast %87 : vector<1x128xf32> to vector<24x128xf32>
    %91 = arith.mulf %29, %90 : vector<24x128xf32>
    %cst_43 = arith.constant dense<0.000000e+00> : vector<24x24xf32>
    %92 = tpu.matmul %27, %89, %cst_43 {dimension_numbers = #tpu.dot_dimension_numbers<[1], [1], [0], [0], [0, 0, 1, 0], [], []>} : vector<24x128xf32>, vector<24x128xf32>, vector<24x24xf32> -> vector<24x24xf32>
    %cst_44 = arith.constant dense<0xFF800000> : vector<24xf32>
    %93 = vector.multi_reduction <maximumf>, %92, %cst_44 [1] : vector<24x24xf32> to vector<24xf32>
    %94 = vector.shape_cast %93 : vector<24xf32> to vector<24x1xf32>
    %95 = vector.broadcast %94 : vector<24x1xf32> to vector<24x24xf32>
    %96 = arith.subf %92, %95 : vector<24x24xf32>
    %97 = math.exp %96 : vector<24x24xf32>
    %cst_45 = arith.constant dense<0.000000e+00> : vector<24xf32>
    %98 = vector.multi_reduction <add>, %97, %cst_45 [1] : vector<24x24xf32> to vector<24xf32>
    %99 = vector.shape_cast %98 : vector<24xf32> to vector<24x1xf32>
    %100 = tpu.reciprocal %99 {approx = true} : vector<24x1xf32> -> vector<24x1xf32>
    %101 = vector.broadcast %100 : vector<24x1xf32> to vector<24x24xf32>
    %102 = arith.mulf %97, %101 : vector<24x24xf32>
    %cst_46 = arith.constant dense<0.000000e+00> : vector<24x128xf32>
    %103 = tpu.matmul %102, %91, %cst_46 {dimension_numbers = #tpu.dot_dimension_numbers<[1], [0], [0], [1], [0, 0, 1, 1], [], []>} : vector<24x24xf32>, vector<24x128xf32>, vector<24x128xf32> -> vector<24x128xf32>
    %104 = arith.addf %79, %103 : vector<24x128xf32>
    %c48_i32_47 = arith.constant 48 : i32
    %105 = vector.broadcast %c48_i32_47 : i32 to vector<1x128xi32>
    %106 = arith.cmpi sge, %30, %105 : vector<1x128xi32>
    %c64_i32 = arith.constant 64 : i32
    %107 = vector.broadcast %c64_i32 : i32 to vector<1x128xi32>
    %108 = arith.cmpi slt, %30, %107 : vector<1x128xi32>
    %109 = arith.andi %106, %108 : vector<1x128xi1>
    %cst_48 = arith.constant 1.000000e+00 : f32
    %cst_49 = arith.constant 0.000000e+00 : f32
    %110 = vector.broadcast %cst_48 : f32 to vector<1x128xf32>
    %111 = vector.broadcast %cst_49 : f32 to vector<1x128xf32>
    %112 = arith.select %109, %110, %111 : vector<1x128xi1>, vector<1x128xf32>
    %113 = vector.broadcast %112 : vector<1x128xf32> to vector<24x128xf32>
    %114 = arith.mulf %28, %113 : vector<24x128xf32>
    %115 = vector.broadcast %112 : vector<1x128xf32> to vector<24x128xf32>
    %116 = arith.mulf %29, %115 : vector<24x128xf32>
    %cst_50 = arith.constant dense<0.000000e+00> : vector<24x24xf32>
    %117 = tpu.matmul %27, %114, %cst_50 {dimension_numbers = #tpu.dot_dimension_numbers<[1], [1], [0], [0], [0, 0, 1, 0], [], []>} : vector<24x128xf32>, vector<24x128xf32>, vector<24x24xf32> -> vector<24x24xf32>
    %cst_51 = arith.constant dense<0xFF800000> : vector<24xf32>
    %118 = vector.multi_reduction <maximumf>, %117, %cst_51 [1] : vector<24x24xf32> to vector<24xf32>
    %119 = vector.shape_cast %118 : vector<24xf32> to vector<24x1xf32>
    %120 = vector.broadcast %119 : vector<24x1xf32> to vector<24x24xf32>
    %121 = arith.subf %117, %120 : vector<24x24xf32>
    %122 = math.exp %121 : vector<24x24xf32>
    %cst_52 = arith.constant dense<0.000000e+00> : vector<24xf32>
    %123 = vector.multi_reduction <add>, %122, %cst_52 [1] : vector<24x24xf32> to vector<24xf32>
    %124 = vector.shape_cast %123 : vector<24xf32> to vector<24x1xf32>
    %125 = tpu.reciprocal %124 {approx = true} : vector<24x1xf32> -> vector<24x1xf32>
    %126 = vector.broadcast %125 : vector<24x1xf32> to vector<24x24xf32>
    %127 = arith.mulf %122, %126 : vector<24x24xf32>
    %cst_53 = arith.constant dense<0.000000e+00> : vector<24x128xf32>
    %128 = tpu.matmul %127, %116, %cst_53 {dimension_numbers = #tpu.dot_dimension_numbers<[1], [0], [0], [1], [0, 0, 1, 1], [], []>} : vector<24x24xf32>, vector<24x128xf32>, vector<24x128xf32> -> vector<24x128xf32>
    %129 = arith.addf %104, %128 : vector<24x128xf32>
    %c64_i32_54 = arith.constant 64 : i32
    %130 = vector.broadcast %c64_i32_54 : i32 to vector<1x128xi32>
    %131 = arith.cmpi sge, %30, %130 : vector<1x128xi32>
    %c80_i32 = arith.constant 80 : i32
    %132 = vector.broadcast %c80_i32 : i32 to vector<1x128xi32>
    %133 = arith.cmpi slt, %30, %132 : vector<1x128xi32>
    %134 = arith.andi %131, %133 : vector<1x128xi1>
    %cst_55 = arith.constant 1.000000e+00 : f32
    %cst_56 = arith.constant 0.000000e+00 : f32
    %135 = vector.broadcast %cst_55 : f32 to vector<1x128xf32>
    %136 = vector.broadcast %cst_56 : f32 to vector<1x128xf32>
    %137 = arith.select %134, %135, %136 : vector<1x128xi1>, vector<1x128xf32>
    %138 = vector.broadcast %137 : vector<1x128xf32> to vector<24x128xf32>
    %139 = arith.mulf %28, %138 : vector<24x128xf32>
    %140 = vector.broadcast %137 : vector<1x128xf32> to vector<24x128xf32>
    %141 = arith.mulf %29, %140 : vector<24x128xf32>
    %cst_57 = arith.constant dense<0.000000e+00> : vector<24x24xf32>
    %142 = tpu.matmul %27, %139, %cst_57 {dimension_numbers = #tpu.dot_dimension_numbers<[1], [1], [0], [0], [0, 0, 1, 0], [], []>} : vector<24x128xf32>, vector<24x128xf32>, vector<24x24xf32> -> vector<24x24xf32>
    %cst_58 = arith.constant dense<0xFF800000> : vector<24xf32>
    %143 = vector.multi_reduction <maximumf>, %142, %cst_58 [1] : vector<24x24xf32> to vector<24xf32>
    %144 = vector.shape_cast %143 : vector<24xf32> to vector<24x1xf32>
    %145 = vector.broadcast %144 : vector<24x1xf32> to vector<24x24xf32>
    %146 = arith.subf %142, %145 : vector<24x24xf32>
    %147 = math.exp %146 : vector<24x24xf32>
    %cst_59 = arith.constant dense<0.000000e+00> : vector<24xf32>
    %148 = vector.multi_reduction <add>, %147, %cst_59 [1] : vector<24x24xf32> to vector<24xf32>
    %149 = vector.shape_cast %148 : vector<24xf32> to vector<24x1xf32>
    %150 = tpu.reciprocal %149 {approx = true} : vector<24x1xf32> -> vector<24x1xf32>
    %151 = vector.broadcast %150 : vector<24x1xf32> to vector<24x24xf32>
    %152 = arith.mulf %147, %151 : vector<24x24xf32>
    %cst_60 = arith.constant dense<0.000000e+00> : vector<24x128xf32>
    %153 = tpu.matmul %152, %141, %cst_60 {dimension_numbers = #tpu.dot_dimension_numbers<[1], [0], [0], [1], [0, 0, 1, 1], [], []>} : vector<24x24xf32>, vector<24x128xf32>, vector<24x128xf32> -> vector<24x128xf32>
    %154 = arith.addf %129, %153 : vector<24x128xf32>
    %c80_i32_61 = arith.constant 80 : i32
    %155 = vector.broadcast %c80_i32_61 : i32 to vector<1x128xi32>
    %156 = arith.cmpi sge, %30, %155 : vector<1x128xi32>
    %c96_i32 = arith.constant 96 : i32
    %157 = vector.broadcast %c96_i32 : i32 to vector<1x128xi32>
    %158 = arith.cmpi slt, %30, %157 : vector<1x128xi32>
    %159 = arith.andi %156, %158 : vector<1x128xi1>
    %cst_62 = arith.constant 1.000000e+00 : f32
    %cst_63 = arith.constant 0.000000e+00 : f32
    %160 = vector.broadcast %cst_62 : f32 to vector<1x128xf32>
    %161 = vector.broadcast %cst_63 : f32 to vector<1x128xf32>
    %162 = arith.select %159, %160, %161 : vector<1x128xi1>, vector<1x128xf32>
    %163 = vector.broadcast %162 : vector<1x128xf32> to vector<24x128xf32>
    %164 = arith.mulf %28, %163 : vector<24x128xf32>
    %165 = vector.broadcast %162 : vector<1x128xf32> to vector<24x128xf32>
    %166 = arith.mulf %29, %165 : vector<24x128xf32>
    %cst_64 = arith.constant dense<0.000000e+00> : vector<24x24xf32>
    %167 = tpu.matmul %27, %164, %cst_64 {dimension_numbers = #tpu.dot_dimension_numbers<[1], [1], [0], [0], [0, 0, 1, 0], [], []>} : vector<24x128xf32>, vector<24x128xf32>, vector<24x24xf32> -> vector<24x24xf32>
    %cst_65 = arith.constant dense<0xFF800000> : vector<24xf32>
    %168 = vector.multi_reduction <maximumf>, %167, %cst_65 [1] : vector<24x24xf32> to vector<24xf32>
    %169 = vector.shape_cast %168 : vector<24xf32> to vector<24x1xf32>
    %170 = vector.broadcast %169 : vector<24x1xf32> to vector<24x24xf32>
    %171 = arith.subf %167, %170 : vector<24x24xf32>
    %172 = math.exp %171 : vector<24x24xf32>
    %cst_66 = arith.constant dense<0.000000e+00> : vector<24xf32>
    %173 = vector.multi_reduction <add>, %172, %cst_66 [1] : vector<24x24xf32> to vector<24xf32>
    %174 = vector.shape_cast %173 : vector<24xf32> to vector<24x1xf32>
    %175 = tpu.reciprocal %174 {approx = true} : vector<24x1xf32> -> vector<24x1xf32>
    %176 = vector.broadcast %175 : vector<24x1xf32> to vector<24x24xf32>
    %177 = arith.mulf %172, %176 : vector<24x24xf32>
    %cst_67 = arith.constant dense<0.000000e+00> : vector<24x128xf32>
    %178 = tpu.matmul %177, %166, %cst_67 {dimension_numbers = #tpu.dot_dimension_numbers<[1], [0], [0], [1], [0, 0, 1, 1], [], []>} : vector<24x24xf32>, vector<24x128xf32>, vector<24x128xf32> -> vector<24x128xf32>
    %179 = arith.addf %154, %178 : vector<24x128xf32>
    %c96_i32_68 = arith.constant 96 : i32
    %180 = vector.broadcast %c96_i32_68 : i32 to vector<1x128xi32>
    %181 = arith.cmpi sge, %30, %180 : vector<1x128xi32>
    %c112_i32 = arith.constant 112 : i32
    %182 = vector.broadcast %c112_i32 : i32 to vector<1x128xi32>
    %183 = arith.cmpi slt, %30, %182 : vector<1x128xi32>
    %184 = arith.andi %181, %183 : vector<1x128xi1>
    %cst_69 = arith.constant 1.000000e+00 : f32
    %cst_70 = arith.constant 0.000000e+00 : f32
    %185 = vector.broadcast %cst_69 : f32 to vector<1x128xf32>
    %186 = vector.broadcast %cst_70 : f32 to vector<1x128xf32>
    %187 = arith.select %184, %185, %186 : vector<1x128xi1>, vector<1x128xf32>
    %188 = vector.broadcast %187 : vector<1x128xf32> to vector<24x128xf32>
    %189 = arith.mulf %28, %188 : vector<24x128xf32>
    %190 = vector.broadcast %187 : vector<1x128xf32> to vector<24x128xf32>
    %191 = arith.mulf %29, %190 : vector<24x128xf32>
    %cst_71 = arith.constant dense<0.000000e+00> : vector<24x24xf32>
    %192 = tpu.matmul %27, %189, %cst_71 {dimension_numbers = #tpu.dot_dimension_numbers<[1], [1], [0], [0], [0, 0, 1, 0], [], []>} : vector<24x128xf32>, vector<24x128xf32>, vector<24x24xf32> -> vector<24x24xf32>
    %cst_72 = arith.constant dense<0xFF800000> : vector<24xf32>
    %193 = vector.multi_reduction <maximumf>, %192, %cst_72 [1] : vector<24x24xf32> to vector<24xf32>
    %194 = vector.shape_cast %193 : vector<24xf32> to vector<24x1xf32>
    %195 = vector.broadcast %194 : vector<24x1xf32> to vector<24x24xf32>
    %196 = arith.subf %192, %195 : vector<24x24xf32>
    %197 = math.exp %196 : vector<24x24xf32>
    %cst_73 = arith.constant dense<0.000000e+00> : vector<24xf32>
    %198 = vector.multi_reduction <add>, %197, %cst_73 [1] : vector<24x24xf32> to vector<24xf32>
    %199 = vector.shape_cast %198 : vector<24xf32> to vector<24x1xf32>
    %200 = tpu.reciprocal %199 {approx = true} : vector<24x1xf32> -> vector<24x1xf32>
    %201 = vector.broadcast %200 : vector<24x1xf32> to vector<24x24xf32>
    %202 = arith.mulf %197, %201 : vector<24x24xf32>
    %cst_74 = arith.constant dense<0.000000e+00> : vector<24x128xf32>
    %203 = tpu.matmul %202, %191, %cst_74 {dimension_numbers = #tpu.dot_dimension_numbers<[1], [0], [0], [1], [0, 0, 1, 1], [], []>} : vector<24x24xf32>, vector<24x128xf32>, vector<24x128xf32> -> vector<24x128xf32>
    %204 = arith.addf %179, %203 : vector<24x128xf32>
    %c112_i32_75 = arith.constant 112 : i32
    %205 = vector.broadcast %c112_i32_75 : i32 to vector<1x128xi32>
    %206 = arith.cmpi sge, %30, %205 : vector<1x128xi32>
    %c128_i32 = arith.constant 128 : i32
    %207 = vector.broadcast %c128_i32 : i32 to vector<1x128xi32>
    %208 = arith.cmpi slt, %30, %207 : vector<1x128xi32>
    %209 = arith.andi %206, %208 : vector<1x128xi1>
    %cst_76 = arith.constant 1.000000e+00 : f32
    %cst_77 = arith.constant 0.000000e+00 : f32
    %210 = vector.broadcast %cst_76 : f32 to vector<1x128xf32>
    %211 = vector.broadcast %cst_77 : f32 to vector<1x128xf32>
    %212 = arith.select %209, %210, %211 : vector<1x128xi1>, vector<1x128xf32>
    %213 = vector.broadcast %212 : vector<1x128xf32> to vector<24x128xf32>
    %214 = arith.mulf %28, %213 : vector<24x128xf32>
    %215 = vector.broadcast %212 : vector<1x128xf32> to vector<24x128xf32>
    %216 = arith.mulf %29, %215 : vector<24x128xf32>
    %cst_78 = arith.constant dense<0.000000e+00> : vector<24x24xf32>
    %217 = tpu.matmul %27, %214, %cst_78 {dimension_numbers = #tpu.dot_dimension_numbers<[1], [1], [0], [0], [0, 0, 1, 0], [], []>} : vector<24x128xf32>, vector<24x128xf32>, vector<24x24xf32> -> vector<24x24xf32>
    %cst_79 = arith.constant dense<0xFF800000> : vector<24xf32>
    %218 = vector.multi_reduction <maximumf>, %217, %cst_79 [1] : vector<24x24xf32> to vector<24xf32>
    %219 = vector.shape_cast %218 : vector<24xf32> to vector<24x1xf32>
    %220 = vector.broadcast %219 : vector<24x1xf32> to vector<24x24xf32>
    %221 = arith.subf %217, %220 : vector<24x24xf32>
    %222 = math.exp %221 : vector<24x24xf32>
    %cst_80 = arith.constant dense<0.000000e+00> : vector<24xf32>
    %223 = vector.multi_reduction <add>, %222, %cst_80 [1] : vector<24x24xf32> to vector<24xf32>
    %224 = vector.shape_cast %223 : vector<24xf32> to vector<24x1xf32>
    %225 = tpu.reciprocal %224 {approx = true} : vector<24x1xf32> -> vector<24x1xf32>
    %226 = vector.broadcast %225 : vector<24x1xf32> to vector<24x24xf32>
    %227 = arith.mulf %222, %226 : vector<24x24xf32>
    %cst_81 = arith.constant dense<0.000000e+00> : vector<24x128xf32>
    %228 = tpu.matmul %227, %216, %cst_81 {dimension_numbers = #tpu.dot_dimension_numbers<[1], [0], [0], [1], [0, 0, 1, 1], [], []>} : vector<24x24xf32>, vector<24x128xf32>, vector<24x128xf32> -> vector<24x128xf32>
    %229 = arith.addf %204, %228 : vector<24x128xf32>
    %c0_82 = arith.constant 0 : index
    %c0_83 = arith.constant 0 : index
    %230 = vector.load %arg12[%c0_82, %c0_83] : memref<128x128xf32, #tpu.memory_space<vmem>>, vector<128x128xf32>
    %cst_84 = arith.constant dense<0.000000e+00> : vector<24x128xf32>
    %231 = tpu.matmul %229, %230, %cst_84 {dimension_numbers = #tpu.dot_dimension_numbers<[1], [0], [0], [1], [0, 0, 1, 1], [], []>} : vector<24x128xf32>, vector<128x128xf32>, vector<24x128xf32> -> vector<24x128xf32>
    %c0_85 = arith.constant 0 : index
    %c0_86 = arith.constant 0 : index
    %232 = vector.load %arg13[%c0_85, %c0_86] : memref<1x128xf32, #tpu.memory_space<vmem>>, vector<1x128xf32>
    %233 = vector.broadcast %232 : vector<1x128xf32> to vector<24x128xf32>
    %234 = arith.addf %231, %233 : vector<24x128xf32>
    %235 = arith.addf %234, %21 : vector<24x128xf32>
    %cst_87 = arith.constant dense<0.000000e+00> : vector<24xf32>
    %236 = vector.multi_reduction <add>, %235, %cst_87 [1] : vector<24x128xf32> to vector<24xf32>
    %237 = vector.shape_cast %236 : vector<24xf32> to vector<24x1xf32>
    %cst_88 = arith.constant 1.280000e+02 : f32
    %238 = vector.broadcast %cst_88 : f32 to vector<24x1xf32>
    %239 = arith.divf %237, %238 : vector<24x1xf32>
    %240 = vector.broadcast %239 : vector<24x1xf32> to vector<24x128xf32>
    %241 = arith.subf %235, %240 : vector<24x128xf32>
    %242 = arith.mulf %241, %241 : vector<24x128xf32>
    %cst_89 = arith.constant dense<0.000000e+00> : vector<24xf32>
    %243 = vector.multi_reduction <add>, %242, %cst_89 [1] : vector<24x128xf32> to vector<24xf32>
    %244 = vector.shape_cast %243 : vector<24xf32> to vector<24x1xf32>
    %cst_90 = arith.constant 1.280000e+02 : f32
    %245 = vector.broadcast %cst_90 : f32 to vector<24x1xf32>
    %246 = arith.divf %244, %245 : vector<24x1xf32>
    %247 = vector.broadcast %239 : vector<24x1xf32> to vector<24x128xf32>
    %248 = arith.subf %235, %247 : vector<24x128xf32>
    %cst_91 = arith.constant 9.99999974E-6 : f32
    %249 = vector.broadcast %cst_91 : f32 to vector<24x1xf32>
    %250 = arith.addf %246, %249 : vector<24x1xf32>
    %251 = math.rsqrt %250 : vector<24x1xf32>
    %252 = vector.broadcast %251 : vector<24x1xf32> to vector<24x128xf32>
    %253 = arith.mulf %248, %252 : vector<24x128xf32>
    %c0_92 = arith.constant 0 : index
    %c0_93 = arith.constant 0 : index
    %254 = vector.load %arg14[%c0_92, %c0_93] : memref<1x128xf32, #tpu.memory_space<vmem>>, vector<1x128xf32>
    %255 = vector.broadcast %254 : vector<1x128xf32> to vector<24x128xf32>
    %256 = arith.mulf %253, %255 : vector<24x128xf32>
    %c0_94 = arith.constant 0 : index
    %c0_95 = arith.constant 0 : index
    %257 = vector.load %arg15[%c0_94, %c0_95] : memref<1x128xf32, #tpu.memory_space<vmem>>, vector<1x128xf32>
    %258 = vector.broadcast %257 : vector<1x128xf32> to vector<24x128xf32>
    %259 = arith.addf %256, %258 : vector<24x128xf32>
    %c0_96 = arith.constant 0 : index
    %c0_97 = arith.constant 0 : index
    %c0_98 = arith.constant 0 : index
    %260 = vector.load %arg16[%c0_96, %c0_97, %c0_98] : memref<1x24x128xf32, #tpu.memory_space<vmem>>, vector<1x24x128xf32>
    %261 = vector.shape_cast %260 : vector<1x24x128xf32> to vector<24x128xf32>
    %262 = vector.shape_cast %259 : vector<24x128xf32> to vector<1x24x128xf32>
    tpu.vector_store %arg16[%c0_96, %c0_97, %c0_98], %262 {strides = array<i32>} : memref<1x24x128xf32, #tpu.memory_space<vmem>>, vector<1x24x128xf32>,
    return
  }
  func.func @transform_0(%arg0: i32) -> (i32, i32, i32) {
    %c0_i32 = arith.constant 0 : i32
    %c0_i32_0 = arith.constant 0 : i32
    %c0_i32_1 = arith.constant 0 : i32
    return %arg0, %c0_i32, %c0_i32_0 : i32, i32, i32
  }
  func.func @transform_1(%arg0: i32) -> (i32, i32, i32) {
    %c0_i32 = arith.constant 0 : i32
    %c0_i32_0 = arith.constant 0 : i32
    %c0_i32_1 = arith.constant 0 : i32
    return %arg0, %c0_i32, %c0_i32_0 : i32, i32, i32
  }
  func.func @transform_2(%arg0: i32) -> (i32, i32, i32) {
    %c0_i32 = arith.constant 0 : i32
    %c0_i32_0 = arith.constant 0 : i32
    %c0_i32_1 = arith.constant 0 : i32
    return %arg0, %c0_i32, %c0_i32_0 : i32, i32, i32
  }
  func.func @transform_3(%arg0: i32) -> (i32, i32) {
    %c0_i32 = arith.constant 0 : i32
    %c0_i32_0 = arith.constant 0 : i32
    %c0_i32_1 = arith.constant 0 : i32
    return %c0_i32, %c0_i32_0 : i32, i32
  }
  func.func @transform_4(%arg0: i32) -> (i32, i32) {
    %c0_i32 = arith.constant 0 : i32
    %c0_i32_0 = arith.constant 0 : i32
    %c0_i32_1 = arith.constant 0 : i32
    return %c0_i32, %c0_i32_0 : i32, i32
  }
  func.func @transform_5(%arg0: i32) -> (i32, i32) {
    %c0_i32 = arith.constant 0 : i32
    %c0_i32_0 = arith.constant 0 : i32
    %c0_i32_1 = arith.constant 0 : i32
    return %c0_i32, %c0_i32_0 : i32, i32
  }
  func.func @transform_6(%arg0: i32) -> (i32, i32) {
    %c0_i32 = arith.constant 0 : i32
    %c0_i32_0 = arith.constant 0 : i32
    %c0_i32_1 = arith.constant 0 : i32
    return %c0_i32, %c0_i32_0 : i32, i32
  }
  func.func @transform_7(%arg0: i32) -> (i32, i32) {
    %c0_i32 = arith.constant 0 : i32
    %c0_i32_0 = arith.constant 0 : i32
    %c0_i32_1 = arith.constant 0 : i32
    return %c0_i32, %c0_i32_0 : i32, i32
  }
  func.func @transform_8(%arg0: i32) -> (i32, i32) {
    %c0_i32 = arith.constant 0 : i32
    %c0_i32_0 = arith.constant 0 : i32
    %c0_i32_1 = arith.constant 0 : i32
    return %c0_i32, %c0_i32_0 : i32, i32
  }
  func.func @transform_9(%arg0: i32) -> (i32, i32) {
    %c0_i32 = arith.constant 0 : i32
    %c0_i32_0 = arith.constant 0 : i32
    %c0_i32_1 = arith.constant 0 : i32
    return %c0_i32, %c0_i32_0 : i32, i32
  }
  func.func @transform_10(%arg0: i32) -> (i32, i32) {
    %c0_i32 = arith.constant 0 : i32
    %c0_i32_0 = arith.constant 0 : i32
    %c0_i32_1 = arith.constant 0 : i32
    return %c0_i32, %c0_i32_0 : i32, i32
  }
  func.func @transform_11(%arg0: i32) -> (i32, i32) {
    %c0_i32 = arith.constant 0 : i32
    %c0_i32_0 = arith.constant 0 : i32
    %c0_i32_1 = arith.constant 0 : i32
    return %c0_i32, %c0_i32_0 : i32, i32
  }
  func.func @transform_12(%arg0: i32) -> (i32, i32) {
    %c0_i32 = arith.constant 0 : i32
    %c0_i32_0 = arith.constant 0 : i32
    %c0_i32_1 = arith.constant 0 : i32
    return %c0_i32, %c0_i32_0 : i32, i32
  }
  func.func @transform_13(%arg0: i32) -> (i32, i32) {
    %c0_i32 = arith.constant 0 : i32
    %c0_i32_0 = arith.constant 0 : i32
    %c0_i32_1 = arith.constant 0 : i32
    return %c0_i32, %c0_i32_0 : i32, i32
  }
  func.func @transform_14(%arg0: i32) -> (i32, i32) {
    %c0_i32 = arith.constant 0 : i32
    %c0_i32_0 = arith.constant 0 : i32
    %c0_i32_1 = arith.constant 0 : i32
    return %c0_i32, %c0_i32_0 : i32, i32
  }
  func.func @transform_15(%arg0: i32) -> (i32, i32, i32) {
    %c0_i32 = arith.constant 0 : i32
    %c0_i32_0 = arith.constant 0 : i32
    %c0_i32_1 = arith.constant 0 : i32
    return %arg0, %c0_i32, %c0_i32_0 : i32, i32, i32
  }
}

</mosaic_0001>

<bundles_post_ra>
// kernel: tpu_custom_call.1
= control target key start
LH: loop header
LB: loop body
LE: loop exit
PB: predicated region body
PF: predicated region fallthrough
CT: control target
= control target key end

     0   :  { %s5426_s0 = inlined_call_operand.hbm [shape: f32[2,8,48], index: 0, kind: input, shape index: {}]   ;;  %s5427_s1 = inlined_call_operand.hbm [shape: f32[2,8,64], index: 1, kind: input, shape index: {}]   ;;  %s5428_s2 = inlined_call_operand.hbm [shape: f32[2,8,32], index: 2, kind: input, shape index: {}]   ;;  %s5429_s3 = inlined_call_operand.hbm [shape: f32[48,128], index: 3, kind: input, shape index: {}]   ;;  %s5430_s4 = inlined_call_operand.vmem [shape: f32[1,128], index: 4, kind: input, shape index: {}]   ;;  %s5431_s5 = inlined_call_operand.hbm [shape: f32[64,128], index: 5, kind: input, shape index: {}]   ;;  %s5432_s6 = inlined_call_operand.vmem [shape: f32[1,128], index: 6, kind: input, shape index: {}]   ;;  %s5433_s7 = inlined_call_operand.hbm [shape: f32[32,128], index: 7, kind: input, shape index: {}]   ;;  %s5434_s8 = inlined_call_operand.vmem [shape: f32[1,128], index: 8, kind: input, shape index: {}]   ;;  %s5435_s9 = inlined_call_operand.hbm [shape: f32[128,384], index: 9, kind: input, shape index: {}]   ;;  %s5436_s10 = inlined_call_operand.vmem [shape: f32[1,384], index: 10, kind: input, shape index: {}]   ;;  %s5437_s11 = inlined_call_operand.hbm [shape: f32[128,128], index: 11, kind: input, shape index: {}]   ;;  %s5438_s12 = inlined_call_operand.vmem [shape: f32[1,128], index: 12, kind: input, shape index: {}]   ;;  %s5439_s13 = inlined_call_operand.vmem [shape: f32[1,128], index: 13, kind: input, shape index: {}]   ;;  %s5440_s14 = inlined_call_operand.vmem [shape: f32[1,128], index: 14, kind: input, shape index: {}]   ;;  %s5441_s15 = inlined_call_operand.hbm [shape: f32[2,24,128], index: 15, kind: output, shape index: {}]  }
   0x1   :  { %5465 = sst [smem:[#allocation29_spill]] %s5427_s1 }
   0x2   :  { %5466 = sst [smem:[#allocation30_spill]] %s5429_s3 }
   0x3   :  { %5467 = sst [smem:[#allocation31_spill]] %s5431_s5 }
   0x4   :  { %5468 = sst [smem:[#allocation32_spill]] %s5433_s7 }
   0x5   :  { %5469 = sst [smem:[#allocation33_spill]] %s5434_s8 }
   0x6   :  { %5470 = sst [smem:[#allocation34_spill]] %s5436_s10 }
   0x7   :  { %5471 = sst [smem:[#allocation35_spill]] %s5438_s12 }
   0x8   :  { %5472 = sst [smem:[#allocation36_spill]] %s5439_s13 }
   0x9   :  { %5473 = sst [smem:[#allocation37_spill]] %s5440_s14 }
   0xa   :  { %5474 = sst [smem:[#allocation38_spill]] %s5441_s15 }
   0xb   :  { %20 = vsyncpa [#allocation3], 0 }
   0xc   :  { %22 = vsyncpa [#allocation3 + $0x1], 0 }
   0xd   :  { %23 = vsyncpa [#allocation6], 0 }
   0xe   :  { %25 = vsyncpa [#allocation6 + $0x1], 0 }
   0xf   :  { %26 = vsyncpa [#allocation9], 0 }
  0x10   :  { %27 = vsyncpa [#allocation12], 0 }
  0x11   :  { %28 = vsyncpa [#allocation15], 0 }
  0x12   :  { %29 = vsyncpa [#allocation4], 0 }
  0x13   :  { %31 = vsyncpa [#allocation4 + $0x1], 0  ;;  %s4397_s18 = smov 0   ;;  %s4399_s19 = smov 0  }
  0x14   :  { %s4401_s20 = smov 0   ;;  %s4403_s21 = smov 0  }
  0x15 LB: > { %5475 = sst [smem:[#allocation23_spill]] %s4286_s18  ;;  %s4300_s22 = smov [#allocation8]   ;;  %s4298_s21 = sphi %s4403_s21, %s5520_s21   ;;  %s4294_s20 = sphi %s4401_s20, %s5524_s20   ;;  %s4290_s19 = sphi %s4399_s19, %s5523_s19   ;;  %s4286_s18 = sphi %s4397_s18, %s5522_s18  }
  0x16   : > { %5476 = sst [smem:[#allocation24_spill]] %s4298_s21  ;;  %s410_s23 = sshll.u32 %s4300_s22, 4  ;;  %s411_s23 = int_to_ptr.vmem [resolvable:$true] %s410_s23 }
  0x17   : > { %s4418_s24 = sadd.s32 4294967295, %s4298_s21   ;;  %p3205_p0 = scmp.ge.s32.totalorder %s4298_s21, 1 }
  0x18   : > { %p5456_p1 = scmp.eq.s32.totalorder %s4418_s24, 0  ;;  %p398_p2 = scmp.lt.s32.totalorder %s4298_s21, 3 }
  0x19   : > { %s4301_s26 = smov [#allocation11]   ;;  %s4015_s30 = scalar_lea.vmem %s411_s23, 768 }
  0x1a   : > { %p4423_p3 = pnand %p3205_p0, %p398_p2  ;;  %s442_s27 = sshll.u32 %s4301_s26, 4  ;;  %s443_s27 = int_to_ptr.vmem [resolvable:$true] %s442_s27 }
  0x1b   : > { %p4016_p8 = scmp.ne.s32.totalorder %s411_s23, %s4015_s30  ;;  %p4023_p11 = scmp.lt.s32.totalorder %s411_s23, %s411_s23 }
  0x1c   : > { %s5477_s25 = scalar_select %p4423_p3, 1, 0 }
  0x1d   : > { %p3815_p5 = pneg %p4423_p3  ;;  %p4024_p12 = scmp.lt.s32.totalorder %s4015_s30, %s4015_s30 }
  0x1f   : > { %p4432_p6 = pnand %p3815_p5, %p5456_p1  ;;  %p4025_p13 = por %p4024_p12, %p4023_p11 }
  0x21   : > { %s5478_s28 = scalar_select %p4432_p6, 1, 0 }
  0x22   : > { %p4438_p7 = pneg %p4432_p6 }
  0x24   : > { %s5479_s29 = scalar_select %p4438_p7, 1, 0 }
  0x25   : > { %p4018_p9 = pnand %p4016_p8, %p4438_p7 }
  0x27   : > { %p4019_p10 = pneg %p4018_p9 }
  0x29   : > { %p4026_p0 = pnand %p4025_p13, %p4019_p10 }
  0x2b   : > { %4029 = shalt.err (!%p4026_p0)
}
  0x2c   : > { %s5443_s16 = smov 128   ;;  %s5446_s17 = smov 8  }
  0x2d   : > { %s5480_s3 = sld [smem:[#allocation30_spill]]  ;;  %s4041_s15 = scalar_lea.vmem %s443_s27, 512 }
  0x2e   : > { %p4042_p2 = scmp.ne.s32.totalorder %s443_s27, %s4041_s15  ;;  %p4049_p9 = scmp.lt.s32.totalorder %s443_s27, %s443_s27 }
  0x2f   : > { %p4050_p10 = scmp.lt.s32.totalorder %s4041_s15, %s4041_s15 }
  0x30   : > { %p4044_p5 = pnand %p4042_p2, %p4438_p7 }
  0x31   : > { %p4051_p11 = por %p4050_p10, %p4049_p9 }
  0x32   : > { %p4045_p8 = pneg %p4044_p5 }
  0x33   : > { %3818 = dma.hbm_to_vmem [thread:$0]  (!%p4432_p6), %s5480_s3, 768, %s411_s23, [#allocation9], %s5443_s16, %s5443_s16, %s5446_s17  }
  0x34   : > { %p4052_p12 = pnand %p4051_p11, %p4045_p8 }
  0x36   : > { %4055 = shalt.err (!%p4052_p12)
}
  0x37   : > { %s5481_s7 = sld [smem:[#allocation32_spill]]  ;;  %s3204_s15 = sadd.s32 4294967294, %s4298_s21  }
  0x38   : > { %s4464_s23 = sadd.s32 1, %s4298_s21   ;;  %s44_s22 = sadd.s32 1, %s4294_s20 }
  0x39   : > { %5482 = sst [smem:[#allocation25_spill]] %s4464_s23  ;;  %s41_s14 = ssub.s32 %s4298_s21, %s4464_s23 }
  0x3a   : > { %p42_p13 = scmp.eq.s32.totalorder %s41_s14, 0  ;;  %p51_p0 = scmp.ne.s32.totalorder %s4294_s20, %s4290_s19 }
  0x3b   : > { %p52_p2 = scmp.eq.s32.totalorder %s4298_s21, 0  ;;  %p57_p5 = scmp.ne.s32.totalorder %s4290_s19, %s4286_s18 }
  0x3c   : > { %s4475_s26 = scalar_select %p42_p13, %s4294_s20, %s44_s22  }
  0x3d   : > { %3824 = dma.hbm_to_vmem [thread:$0]  (!%p4432_p6), %s5481_s7, 512, %s443_s27, [#allocation12], %s5443_s16, %s5443_s16, %s5446_s17  }
  0x3e   : > { %5483 = sst [smem:[#allocation26_spill]] %s4475_s26  ;;  %p53_p8 = por %p52_p2, %p51_p0 }
  0x3f   : > { %p4479_p9 = por %p5456_p1, %p57_p5  ;;  %p385_p10 = scmp.eq.s32.totalorder %s4418_s24, 1 }
  0x40   : > { %p391_p11 = scmp.eq.s32.totalorder %s3204_s15, 1  ;;  %p3850_p12 = scmp.lt.s32.totalorder %s4298_s21, 2 }
  0x41   : > { %s5484_s30 = scalar_select %p4479_p9, 1, 0 }
  0x42   : > { %s5450_s27 = sand.u32 1, %s4294_s20   ;;  %p4486_p4 = por %p385_p10, %p51_p0 }
  0x43   : > { %p4490_p3 = por %p391_p11, %p57_p5  ;;  %s4496_s22 = sshll.u32 %s5450_s27, 3 }
  0x44   : > { %s5485_s16 = scalar_select %p4486_p4, 1, 0 }
  0x45   : > { %s5487_s14 = scalar_select %p4490_p3, 1, 0 }
  0x46   : > { %5486 = sst [smem:[#allocation27_spill]] %s5485_s16  ;;  %s4499_s17 = sshll.u32 %s4298_s21, 7 }
  0x47   : > { %5488 = sst [smem:[#allocation28_spill]] %s5487_s14  ;;  %p4501_p13 = pnand %p3850_p12, %p53_p8 }
  0x48   : > { %s515_s15 = sand.u32 1, %s4298_s21   ;;  %s5490_s1 = sld [smem:[#allocation29_spill]] }
  0x49   : > { %s519_s27 = scalar_lea.vmem [#allocation5], %s4496_s22  ;;  %s4304_s18 = smov [#allocation10]  }
  0x4a   : > { %s526_s14 = sshll.u32 %s519_s27, 4  ;;  %s426_s16 = sshll.u32 %s4304_s18, 4  ;;  %s4513_s14 = int_to_ptr.vmem [resolvable:$true] %s526_s14  ;;  %s427_s16 = int_to_ptr.vmem [resolvable:$true] %s426_s16 }
  0x4b   : > { %s4515_s13 = scalar_lea.sflag [#allocation6], %s515_s15  ;;  %p4521_p2 = pneg %p4501_p13 }
  0x4d   : > { %s5491_s21 = scalar_select %p4521_p2, 1, 0 }
  0x4e   : > { %s4510_s23 = scalar_lea.hbm %s5490_s1, %s4499_s17  ;;  %s4061_s27 = scalar_lea.hbm %s5490_s1, 256 }
  0x4f   : > { %s4056_s12 = scalar_lea.hbm %s4510_s23, 128  ;;  %p4062_p10 = scmp.lt.s32.totalorder %s4510_s23, %s5490_s1 }
  0x50   : > { %p4057_p0 = scmp.ne.s32.totalorder %s4510_s23, %s4056_s12  ;;  %p4063_p11 = scmp.lt.s32.totalorder %s4061_s27, %s4056_s12 }
  0x52   : > { %p4059_p5 = pnand %p4521_p2, %p4057_p0  ;;  %p4064_p12 = por %p4063_p11, %p4062_p10 }
  0x54   : > { %p4060_p8 = pneg %p4059_p5 }
  0x56   : > { %p4065_p1 = pnand %p4064_p12, %p4060_p8 }
  0x58   : > { %4068 = shalt.err (!%p4065_p1)
}
  0x59   : > { %s4069_s18 = scalar_lea.vmem %s4513_s14, 128  ;;  %s4305_s15 = smov [#allocation5]  }
  0x5a   : > { %p4070_p3 = scmp.ne.s32.totalorder %s4513_s14, %s4069_s18  ;;  %s4074_s7 = sshll.u32 %s4305_s15, 4  ;;  %s4075_s7 = int_to_ptr.vmem [resolvable:$false] %s4074_s7 }
  0x5b   : > { %s4076_s26 = scalar_lea.vmem %s4075_s7, 256  ;;  %p4077_p4 = scmp.lt.s32.totalorder %s4513_s14, %s4075_s7 }
  0x5c   : > { %p4072_p0 = pnand %p4070_p3, %p4521_p2  ;;  %p4078_p9 = scmp.lt.s32.totalorder %s4076_s26, %s4069_s18 }
  0x5e   : > { %p4073_p5 = pneg %p4072_p0  ;;  %p4079_p6 = por %p4078_p9, %p4077_p4 }
  0x60   : > { %p4080_p7 = pnand %p4079_p6, %p4073_p5 }
  0x62   : > { %4083 = shalt.err (!%p4080_p7)
}
  0x63   : > { %3837 = dma.hbm_to_vmem [thread:$0]  (!%p4501_p13), %s4510_s23, 128, %s4513_s14, %s4515_s13  }
  0x64   : > { %s4095_s8 = scalar_lea.vmem %s427_s16, 1024  ;;  %p5492_p3 = scmp.ne.s32.totalorder %s5479_s29, 0 }
  0x65   : > { %p4096_p1 = scmp.ne.s32.totalorder %s427_s16, %s4095_s8  ;;  %p4103_p11 = scmp.lt.s32.totalorder %s427_s16, %s427_s16 }
  0x66   : > { %p4104_p12 = scmp.lt.s32.totalorder %s4095_s8, %s4095_s8 }
  0x67   : > { %p4098_p8 = pnand %p4096_p1, %p5492_p3 }
  0x68   : > { %p4105_p0 = por %p4104_p12, %p4103_p11 }
  0x69   : > { %p4099_p10 = pneg %p4098_p8 }
  0x6b   : > { %p4106_p2 = pnand %p4105_p0, %p4099_p10 }
  0x6d   : > { %4109 = shalt.err (!%p4106_p2)
}
  0x6e   : > { %p5493_p4 = scmp.ne.s32.totalorder %s5478_s28, 0  ;;  %s5494_s10 = smov 8  }
  0x6f   : > { %s5495_s12 = smov 128   ;;  %s5496_s5 = sld [smem:[#allocation31_spill]] }
  0x70   : > { %s4306_s23 = smov [#allocation13]  }
  0x71   : > { %s458_s14 = sshll.u32 %s4306_s23, 4  ;;  %s459_s14 = int_to_ptr.vmem [resolvable:$true] %s458_s14 }
  0x72   : > { %s4121_s15 = scalar_lea.vmem %s459_s14, 6144  ;;  %p4129_p5 = scmp.lt.s32.totalorder %s459_s14, %s459_s14 }
  0x73   : > { %p4122_p6 = scmp.ne.s32.totalorder %s459_s14, %s4121_s15  ;;  %p4130_p2 = scmp.lt.s32.totalorder %s4121_s15, %s4121_s15 }
  0x75   : > { %3821 = dma.hbm_to_vmem [thread:$0]  (!%p5493_p4), %s5496_s5, 1024, %s427_s16, [#allocation9], %s5495_s12, %s5495_s12, %s5494_s10  }
  0x76   : > { %p4124_p7 = pnand %p4122_p6, %p5492_p3  ;;  %p4131_p1 = por %p4130_p2, %p4129_p5 }
  0x78   : > { %p4125_p9 = pneg %p4124_p7 }
  0x7a   : > { %p4132_p8 = pnand %p4131_p1, %p4125_p9 }
  0x7c   : > { %4135 = shalt.err (!%p4132_p8)
}
  0x7d   : > { %s4307_s7 = smov 384   ;;  %s4308_s26 = smov 24  }
  0x7e   : > { %3827 = dma.hbm_to_vmem [thread:$0]  (!%p5493_p4), %s5435_s9, 6144, %s459_s14, [#allocation12], %s4307_s7, %s4307_s7, %s4308_s26  }
  0x7f   : > { %s4309_s27 = smov [#allocation14]   ;;  %s4565_s15 = scalar_lea.hbm %s5426_s0, %s4499_s17 }
  0x80   : > { %s474_s18 = sshll.u32 %s4309_s27, 4  ;;  %s475_s18 = int_to_ptr.vmem [resolvable:$true] %s474_s18 }
  0x81   : > { %s4147_s5 = scalar_lea.vmem %s475_s18, 2048  ;;  %p4155_p0 = scmp.lt.s32.totalorder %s475_s18, %s475_s18 }
  0x82   : > { %p4148_p10 = scmp.ne.s32.totalorder %s475_s18, %s4147_s5  ;;  %p4156_p6 = scmp.lt.s32.totalorder %s4147_s5, %s4147_s5 }
  0x84   : > { %p4150_p11 = pnand %p4148_p10, %p5492_p3  ;;  %p4157_p7 = por %p4156_p6, %p4155_p0 }
  0x86   : > { %p4151_p12 = pneg %p4150_p11 }
  0x88   : > { %p4158_p9 = pnand %p4157_p7, %p4151_p12 }
  0x8a   : > { %4161 = shalt.err (!%p4158_p9)
}
  0x8b   : > { %3830 = dma.hbm_to_vmem [thread:$0]  (!%p5493_p4), %s5437_s11, 2048, %s475_s18, [#allocation15], %s5495_s12, %s5495_s12, %s5494_s10  }
  0x8c   : > { %s501_s1 = scalar_lea.vmem [#allocation2], %s4496_s22  ;;  %s4582_s28 = scalar_lea.hbm %s5428_s2, %s4499_s17 }
  0x8d   : > { %s508_s5 = sshll.u32 %s501_s1, 4  ;;  %s5497_s16 = sand.u32 1, %s4294_s20   ;;  %s509_s5 = int_to_ptr.vmem [resolvable:$true] %s508_s5 }
  0x8e   : > { %s498_s8 = scalar_lea.sflag [#allocation3], %s5497_s16  ;;  %s4162_s27 = scalar_lea.hbm %s4565_s15, 128 }
  0x8f   : > { %p4163_p3 = scmp.ne.s32.totalorder %s4565_s15, %s4162_s27  ;;  %p5498_p5 = scmp.ne.s32.totalorder %s5491_s21, 0 }
  0x90   : > { %s4167_s7 = scalar_lea.hbm %s5426_s0, 256  ;;  %p4168_p4 = scmp.lt.s32.totalorder %s4565_s15, %s5426_s0 }
  0x91   : > { %p4165_p2 = pnand %p4163_p3, %p5498_p5  ;;  %p4169_p8 = scmp.lt.s32.totalorder %s4167_s7, %s4162_s27 }
  0x93   : > { %p4166_p1 = pneg %p4165_p2  ;;  %p4170_p10 = por %p4169_p8, %p4168_p4 }
  0x95   : > { %p4171_p11 = pnand %p4170_p10, %p4166_p1 }
  0x97   : > { %4174 = shalt.err (!%p4171_p11)
}
  0x98   : > { %s4175_s17 = scalar_lea.vmem %s509_s5, 128  ;;  %s4310_s18 = smov [#allocation2]  }
  0x99   : > { %p4176_p12 = scmp.ne.s32.totalorder %s509_s5, %s4175_s17  ;;  %s4180_s1 = sshll.u32 %s4310_s18, 4  ;;  %s4181_s1 = int_to_ptr.vmem [resolvable:$false] %s4180_s1 }
  0x9a   : > { %s4182_s29 = scalar_lea.vmem %s4181_s1, 256  ;;  %p4183_p7 = scmp.lt.s32.totalorder %s509_s5, %s4181_s1 }
  0x9b   : > { %p4178_p0 = pnand %p4176_p12, %p5498_p5  ;;  %p4184_p9 = scmp.lt.s32.totalorder %s4182_s29, %s4175_s17 }
  0x9d   : > { %p4179_p6 = pneg %p4178_p0  ;;  %p4185_p3 = por %p4184_p9, %p4183_p7 }
  0x9f   : > { %p4186_p2 = pnand %p4185_p3, %p4179_p6 }
  0xa1   : > { %4189 = shalt.err (!%p4186_p2)
}
  0xa2   : > { %3834 = dma.hbm_to_vmem [thread:$0]  (!%p4501_p13), %s4565_s15, 128, %s509_s5, %s498_s8  }
  0xa3   : > { %s537_s26 = scalar_lea.vmem [#allocation7], %s4496_s22  ;;  %s4190_s27 = scalar_lea.hbm %s4582_s28, 128 }
  0xa4   : > { %s544_s16 = sshll.u32 %s537_s26, 4  ;;  %p4191_p1 = scmp.ne.s32.totalorder %s4582_s28, %s4190_s27  ;;  %s545_s16 = int_to_ptr.vmem [resolvable:$true] %s544_s16 }
  0xa5   : > { %s4195_s7 = scalar_lea.hbm %s5428_s2, 256  ;;  %p4196_p10 = scmp.lt.s32.totalorder %s4582_s28, %s5428_s2 }
  0xa6   : > { %p4193_p4 = pnand %p4191_p1, %p5498_p5  ;;  %p4197_p11 = scmp.lt.s32.totalorder %s4195_s7, %s4190_s27 }
  0xa8   : > { %p4194_p8 = pneg %p4193_p4  ;;  %p4198_p12 = por %p4197_p11, %p4196_p10 }
  0xaa   : > { %p4199_p0 = pnand %p4198_p12, %p4194_p8 }
  0xac   : > { %4202 = shalt.err (!%p4199_p0)
}
  0xad   : > { %s4203_s22 = scalar_lea.vmem %s545_s16, 128  ;;  %s4311_s15 = smov [#allocation7]  }
  0xae   : > { %p4204_p6 = scmp.ne.s32.totalorder %s545_s16, %s4203_s22  ;;  %s4208_s5 = sshll.u32 %s4311_s15, 4  ;;  %s4209_s5 = int_to_ptr.vmem [resolvable:$false] %s4208_s5 }
  0xaf   : > { %s4210_s8 = scalar_lea.vmem %s4209_s5, 256  ;;  %p4211_p3 = scmp.lt.s32.totalorder %s545_s16, %s4209_s5 }
  0xb0   : > { %p4206_p7 = pnand %p4204_p6, %p5498_p5  ;;  %p4212_p2 = scmp.lt.s32.totalorder %s4210_s8, %s4203_s22 }
  0xb2   : > { %p4207_p9 = pneg %p4206_p7  ;;  %p4213_p1 = por %p4212_p2, %p4211_p3 }
  0xb4   : > { %p4214_p4 = pnand %p4213_p1, %p4207_p9 }
  0xb6   : > { %4217 = shalt.err (!%p4214_p4)
}
  0xb7   : > { %3840 = dma.hbm_to_vmem [thread:$0]  (!%p4501_p13), %s4582_s28, 128, %s545_s16, %s4515_s13  }
  0xb8   : > { %p5499_p8 = scmp.ne.s32.totalorder %s5477_s25, 0 }
  0xb9   : > { %s4623_s21 = sand.u32 (!%p5499_p8), 1, %s4290_s19   ;;  %p5500_p5 = scmp.ne.s32.totalorder (!%p5499_p8), %s5484_s30, 0 }
  0xba   : > { %553 = sbr.rel (%p5499_p8) target bundleno = 2450 (0x992), region = 80  ;;  %s4626_s17 = sshll.u32 (!%p5499_p8), %s4623_s21, 3 }
  0xbb   : > { %s556_s18 = scalar_lea.sflag (!%p5499_p8), [#allocation3], %s4623_s21  ;;  %s559_s1 = scalar_lea.vmem (!%p5499_p8), [#allocation2], %s4626_s17 }
  0xbf   : > { %4261 = dma.done.wait (%p5500_p5), %s556_s18, 128  }
  0xc0   : > { %4263 = vsyncadd (%p5500_p5), %s556_s18, 4294967168  ;;  %s564_s3 = sand.u32 1, %s4418_s24   ;;  %s568_s25 = scalar_lea.vmem [#allocation5], %s4626_s17 }
  0xc1   : > { %s565_s13 = scalar_lea.sflag [#allocation6], %s564_s3 }
  0xc2   : > { %4265 = dma.done.wait (%p5500_p5), %s565_s13, 256  }
  0xc3   : > { %4267 = vsyncadd (%p5500_p5), %s565_s13, 4294967040  ;;  %s577_s28 = scalar_lea.vmem [#allocation7], %s4626_s17  ;;  %p5501_p13 = scmp.eq.s32.totalorder %s4418_s24, 0 }
  0xc5   : > { %4269 = dma.done.wait (%p5501_p13), [#allocation9], 1792   ;;  %p5502_p10 = pmov %p5501_p13 }
  0xc7   : > { %4271 = vsyncadd (%p5502_p10), [#allocation9], 4294965504  ;;  %p5503_p11 = pmov %p5502_p10 }
  0xc8   : > { %p5504_p12 = pmov %p5502_p10 }
  0xc9   : > { %4273 = dma.done.wait (%p5503_p11), [#allocation12], 6656  }
  0xca   : > { %4275 = vsyncadd (%p5504_p12), [#allocation12], 4294960640  ;;  %p5505_p0 = pmov %p5502_p10 }
  0xcc   : > { %4277 = dma.done.wait (%p5505_p0), [#allocation15], 2048   ;;  %p5506_p6 = pmov %p5505_p0 }
  0xcd   : > { %v4312_v0 = vmov 0.0   ;;  %vm4313_vm0 = vmmov 0   ;;  %v659_v1 = vld [vmem:[#allocation8 + $0x28] sm:$0xff]  ;;  %v658_v2 = vld [vmem:[#allocation8 + $0x20] sm:$0xff]  ;;  %v657_v3 = vld [vmem:[#allocation8 + $0x18] sm:$0xff]  ;;  %vm668_vm1 = vcmask 392192  }
  0xce   : > { %4279 = vsyncadd (%p5506_p6), [#allocation15], 4294965248  ;;  %3418 = vmatprep.subr.mxu0 %v4312_v0  ;;  %3430 = vmatprep.mubr.msk.f32.mxu0 %vm4313_vm0, %v4312_v0  ;;  %v656_v4 = vld [vmem:[#allocation8 + $0x10] sm:$0xff]  ;;  %v655_v5 = vld [vmem:[#allocation8 + $0x8] sm:$0xff]  ;;  %vm758_vm2 = vcmask 523264   ;;  %vm844_vm3 = vcmask 261120  }
  0xcf   : > { %1047 = vmatprep.mubr.f32.mxu1 %v4312_v0  ;;  %3419 = vmatpush3.msra.mxu0 %v659_v1  ;;  %v964_v6 = vld [vmem:[#allocation13 + $0x170] sm:$0xff]  ;;  %v963_v7 = vld [vmem:[#allocation13 + $0x168] sm:$0xff]  ;;  %v961_v9 = vld [vmem:[#allocation13 + $0x158] sm:$0xff]  ;;  %s5507_s14 = sld [smem:[#allocation33_spill]]  ;;  %s3786_s29 = smul.u32 384, %s4418_s24 }
  0xd0   : > { %3420 = vmatprep.subr.mxu0 %v4312_v0  ;;  %v654_v8 = vld [vmem:[#allocation8] sm:$0xff]  ;;  %983 = vmatprep.subr.mxu1 %v964_v6  ;;  %v661_v11 = vld [vmem:[%s559_s1] sm:$0xff]  ;;  %v749_v12 = vld [vmem:[#allocation10 + $0x38] sm:$0xff]  ;;  %s5508_s12 = sld [smem:[#allocation34_spill]]  ;;  %s3785_s1 = smul.u32 24, %s4623_s21 }
  0xd1   : > { %3421 = vmatpush3.msra.mxu0 %v658_v2  ;;  %v960_v10 = vld [vmem:[#allocation13 + $0x150] sm:$0xff]  ;;  %984 = vmatpush1.msra.mxu1 %v963_v7  ;;  %v958_v13 = vld [vmem:[#allocation13 + $0x140] sm:$0xff]  ;;  %v957_v15 = vld [vmem:[#allocation13 + $0x138] sm:$0xff]  ;;  %s5509_s5 = sld [smem:[#allocation35_spill]]  ;;  %s3027_s7 = scalar_lea.sflag [#allocation4], %s4623_s21 }
  0xd2   : > { %3422 = vmatprep.subr.mxu0 %v4312_v0  ;;  %985 = vmatprep.subr.mxu1 %v961_v9  ;;  %v748_v14 = vld [vmem:[#allocation10 + $0x30] sm:$0xff]  ;;  %v955_v16 = vld [vmem:[#allocation13 + $0x128] sm:$0xff]  ;;  %v954_v18 = vld [vmem:[#allocation13 + $0x120] sm:$0xff]  ;;  %s5510_s18 = sld [smem:[#allocation36_spill]]  ;;  %s4314_s24 = smov [#allocation16]  }
  0xd3   : > { %3423 = vmatpush3.msra.mxu0 %v657_v3  ;;  %986 = vmatpush1.msra.mxu1 %v960_v10  ;;  %v747_v17 = vld [vmem:[#allocation10 + $0x28] sm:$0xff]  ;;  %v952_v19 = vld [vmem:[#allocation13 + $0x110] sm:$0xff]  ;;  %v746_v20 = vld [vmem:[#allocation10 + $0x20] sm:$0xff]  ;;  %s5512_s30 = sld [smem:[#allocation27_spill]] }
  0xd4   : > { %3424 = vmatprep.subr.mxu0 %v4312_v0  ;;  %987 = vmatprep.subr.mxu1 %v958_v13  ;;  %v951_v21 = vld [vmem:[#allocation13 + $0x108] sm:$0xff]  ;;  %v949_v22 = vld [vmem:[#allocation13 + $0xf8] sm:$0xff]  ;;  %v948_v24 = vld [vmem:[#allocation13 + $0xf0] sm:$0xff]  ;;  %s5513_s23 = sld [smem:[#allocation38_spill]] }
  0xd5   : > { %3425 = vmatpush3.msra.mxu0 %v656_v4  ;;  %988 = vmatpush1.msra.mxu1 %v957_v15  ;;  %v745_v23 = vld [vmem:[#allocation10 + $0x18] sm:$0xff]  ;;  %v946_v25 = vld [vmem:[#allocation13 + $0xe0] sm:$0xff]  ;;  %v744_v26 = vld [vmem:[#allocation10 + $0x10] sm:$0xff] }
  0xd6   : > { %3426 = vmatprep.subr.mxu0 %v4312_v0  ;;  %989 = vmatprep.subr.mxu1 %v955_v16  ;;  %v945_v27 = vld [vmem:[#allocation13 + $0xd8] sm:$0xff]  ;;  %v943_v28 = vld [vmem:[#allocation13 + $0xc8] sm:$0xff]  ;;  %v942_v30 = vld [vmem:[#allocation13 + $0xc0] sm:$0xff] }
  0xd7   : > { %3427 = vmatpush3.msra.mxu0 %v655_v5  ;;  %990 = vmatpush1.msra.mxu1 %v954_v18  ;;  %v743_v29 = vld [vmem:[#allocation10 + $0x8] sm:$0xff]  ;;  %v940_v31 = vld [vmem:[#allocation13 + $0xb0] sm:$0xff]  ;;  %v742_v32 = vld [vmem:[#allocation10] sm:$0xff] }
  0xd8   : > { %3428 = vmatprep.subr.mxu0 %v4312_v0  ;;  %991 = vmatprep.subr.mxu1 %v952_v19  ;;  %v939_v33 = vld [vmem:[#allocation13 + $0xa8] sm:$0xff]  ;;  %v751_v34 = vld [vmem:[%s568_s25] sm:$0xff]  ;;  %v934_v39 = vld [vmem:[#allocation13 + $0x80] sm:$0xff]  ;;  %v968_v19 = vlaneseq  ;;  %s5511_s25 = sld [smem:[#allocation37_spill]] }
  0xd9   : > { %3429 = vmatpush3.msra.mxu0 %v654_v8  ;;  %992 = vmatpush1.msra.mxu1 %v951_v21  ;;  %v835_v35 = vld [vmem:[#allocation11 + $0x18] sm:$0xff]  ;;  %v834_v37 = vld [vmem:[#allocation11 + $0x10] sm:$0xff]  ;;  %v833_v40 = vld [vmem:[#allocation11 + $0x8] sm:$0xff]  ;;  %p5514_p9 = scmp.ne.s32.totalorder %s5512_s30, 0 }
  0xda   : > { %3431 = vmatmul.mubr.msk.f32.vlgmr.msra.gmra.mxu0 %vm668_vm1, %v661_v11  ;;  %3433 = vmatprep.subr.mxu0 %v4312_v0  ;;  %v937_v36 = vld [vmem:[#allocation13 + $0x98] sm:$0xff]  ;;  %v936_v38 = vld [vmem:[#allocation13 + $0x90] sm:$0xff]  ;;  %v931_v42 = vld [vmem:[#allocation13 + $0x68] sm:$0xff]  ;;  %v4737_v21 = vshrl.u32 %v968_v19, 7 }
  0xdb   : > { %3434 = vmatpush3.msra.mxu0 %v749_v12  ;;  %3449 = vmatprep.mubr.msk.f32.mxu0 %vm4313_vm0, %v4312_v0  ;;  %v933_v41 = vld [vmem:[#allocation13 + $0x78] sm:$0xff]  ;;  %v832_v43 = vld [vmem:[#allocation11] sm:$0xff]  ;;  %v928_v47 = vld [vmem:[#allocation13 + $0x50] sm:$0xff] }
  0xdc   : > { %3435 = vmatprep.subr.mxu0 %v4312_v0  ;;  %993 = vmatprep.subr.mxu1 %v949_v22  ;;  %v930_v44 = vld [vmem:[#allocation13 + $0x60] sm:$0xff]  ;;  %v965_v46 = vld [vmem:[#allocation13 + $0x178] sm:$0xff]  ;;  %v927_v48 = vld [vmem:[#allocation13 + $0x48] sm:$0xff]  ;;  %v978_v22 = vsub.s32 2, %v4737_v21 }
  0xdd   : > { %3436 = vmatpush3.msra.mxu0 %v748_v14  ;;  %994 = vmatpush1.msra.mxu1 %v948_v24  ;;  %v837_v45 = vld [vmem:[%s577_s28] sm:$0xff]  ;;  %v925_v50 = vld [vmem:[#allocation13 + $0x38] sm:$0xff]  ;;  %v924_v51 = vld [vmem:[#allocation13 + $0x30] sm:$0xff]  ;;  %v974_v24 = vsub.s32 1, %v4737_v21  ;;  %s653_s28 = scalar_lea.vmem [#allocation16], %s3785_s1 }
  0xde   : > { %3437 = vmatprep.subr.mxu0 %v4312_v0  ;;  %995 = vmatprep.subr.mxu1 %v946_v25  ;;  %v962_v49 = vld [vmem:[#allocation13 + $0x160] sm:$0xff]  ;;  %v959_v52 = vld [vmem:[#allocation13 + $0x148] sm:$0xff]  ;;  %v956_v54 = vld [vmem:[#allocation13 + $0x130] sm:$0xff]  ;;  %s3040_s26 = sshll.u32 %s653_s28, 4  ;;  %s5383_s26 = int_to_ptr.vmem [resolvable:$true] %s3040_s26 }
  0xdf   : > { %3438 = vmatpush3.msra.mxu0 %v747_v17  ;;  %996 = vmatpush1.msra.mxu1 %v945_v27  ;;  %v922_v53 = vld [vmem:[#allocation13 + $0x20] sm:$0xff]  ;;  %v953_v55 = vld [vmem:[#allocation13 + $0x118] sm:$0xff]  ;;  %v947_v57 = vld [vmem:[#allocation13 + $0xe8] sm:$0xff]  ;;  %s4218_s10 = scalar_lea.vmem %s5383_s26, 384 }
  0xe0   : > { %3439 = vmatprep.subr.mxu0 %v4312_v0  ;;  %997 = vmatprep.subr.mxu1 %v943_v28  ;;  %v950_v56 = vld [vmem:[#allocation13 + $0x100] sm:$0xff]  ;;  %v944_v58 = vld [vmem:[#allocation13 + $0xd0] sm:$0xff]  ;;  %v941_v59 = vld [vmem:[#allocation13 + $0xb8] sm:$0xff]  ;;  %p4219_p7 = scmp.ne.s32.totalorder %s5383_s26, %s4218_s10 }
  0xe1   : > { %3440 = vmatpush3.msra.mxu0 %v746_v20  ;;  %998 = vmatpush1.msra.mxu1 %v942_v30  ;;  %v938_v60 = vld [vmem:[#allocation13 + $0xa0] sm:$0xff]  ;;  %v935_v61 = vld [vmem:[#allocation13 + $0x88] sm:$0xff]  ;;  %v932_v62 = vld [vmem:[#allocation13 + $0x70] sm:$0xff]  ;;  %v4735_v20 = vand.u32 127, %v968_v19 }
  0xe2   : > { %3441 = vmatprep.subr.mxu0 %v4312_v0  ;;  %999 = vmatprep.subr.mxu1 %v940_v31  ;;  %v929_v63 = vld [vmem:[#allocation13 + $0x58] sm:$0xff]  ;;  %v926_v1 = vld [vmem:[#allocation13 + $0x40] sm:$0xff]  ;;  %v923_v3 = vld [vmem:[#allocation13 + $0x28] sm:$0xff]  ;;  %p4220_p3 = pnand %p4219_p7, %p5514_p9 }
  0xe3   : > { %3442 = vmatpush3.msra.mxu0 %v745_v23  ;;  %1000 = vmatpush1.msra.mxu1 %v939_v33  ;;  %v921_v2 = vld [vmem:[#allocation13 + $0x18] sm:$0xff]  ;;  %v919_v4 = vld [vmem:[#allocation13 + $0x8] sm:$0xff]  ;;  %v918_v5 = vld [vmem:[#allocation13] sm:$0xff]  ;;  %vm1573_vm4 = vcmp.ge.s32.totalorder %v4735_v20, 32  ;;  %vm1574_vm5 = vcmp.lt.s32.totalorder %v4735_v20, 48  ;;  %vm1788_vm6 = vcmp.ge.s32.totalorder %v4735_v20, 48 }
  0xe4   : > { %3443 = vmatprep.subr.mxu0 %v4312_v0  ;;  %1001 = vmatprep.subr.mxu1 %v937_v36  ;;  %v920_v6 = vld [vmem:[#allocation13 + $0x10] sm:$0xff]  ;;  %v3227_v7 = vld [vmem:[%s5430_s4] ss:$0 sm:$0xff]  ;;  %vm1789_vm7 = vcmp.lt.s32.totalorder %v4735_v20, 64  ;;  %vm2003_vm8 = vcmp.ge.s32.totalorder %v4735_v20, 64  ;;  %vm2004_vm9 = vcmp.lt.s32.totalorder %v4735_v20, 80  ;;  %vm1575_vm10 = vmand %vm1573_vm4, %vm1574_vm5  ;;  %p4221_p2 = pneg %p4220_p3 }
  0xe5   : > { %3444 = vmatpush3.msra.mxu0 %v744_v26  ;;  %1002 = vmatpush1.msra.mxu1 %v936_v38  ;;  %v3229_v11 = vld [vmem:[%s5432_s6] ss:$0 sm:$0xff]  ;;  %vm2218_vm11 = vcmp.ge.s32.totalorder %v4735_v20, 80  ;;  %vm2219_vm12 = vcmp.lt.s32.totalorder %v4735_v20, 96  ;;  %vm1790_vm13 = vmand %vm1788_vm6, %vm1789_vm7  ;;  %vm2433_vm14 = vcmp.ge.s32.totalorder %v4735_v20, 96  ;;  %vm2434_vm15 = vcmp.lt.s32.totalorder %v4735_v20, 112 }
  0xe6   : > { %3445 = vmatprep.subr.mxu0 %v4312_v0  ;;  %1003 = vmatprep.subr.mxu1 %v934_v39  ;;  %v3231_v15 = vld [vmem:[%s5507_s14] ss:$0 sm:$0xff]  ;;  %vm2005_vm1 = vmand %vm2003_vm8, %vm2004_vm9  ;;  %v1791_v30 = vsel %vm1790_vm13, 1.0, %v4312_v0  ;;  %vm2648_vm4 = vcmp.ge.s32.totalorder %v4735_v20, 112  ;;  %vm1272_vm5 = vcmp.ge.s32.totalorder %v4735_v20, 16  ;;  %vm1273_vm6 = vcmp.lt.s32.totalorder %v4735_v20, 32  ;;  %s5381_s14 = scalar_lea.hbm %s5513_s23, %s3786_s29 }
  0xe7   : > { %3446 = vmatpush3.msra.mxu0 %v743_v29  ;;  %1004 = vmatpush1.msra.mxu1 %v933_v41  ;;  %v4749_v23 = vld [vmem:[%s5508_s12] sm:$0x7]  ;;  %v1576_v29 = vsel %vm1575_vm10, 1.0, %v4312_v0  ;;  %v2651_v38 = vsel %vm2648_vm4, 1.0, %v4312_v0  ;;  %vm1149_vm7 = vcmp.lt.s32.totalorder %v4735_v20, 16  ;;  %vm1274_vm8 = vmand %vm1272_vm5, %vm1273_vm6  ;;  %vm1238_vm9 = vcmask 195584  }
  0xe8   : > { %3447 = vmatprep.subr.mxu0 %v4312_v0  ;;  %1005 = vmatprep.subr.mxu1 %v931_v42  ;;  %v979_v25 = vrot.slane %v4749_v23, %v978_v22  ;;  %v975_v26 = vrot.slane %v4749_v23, %v974_v24  ;;  %s4222_s12 = sshll.u32 %s4314_s24, 4  ;;  %s4223_s12 = int_to_ptr.vmem [resolvable:$false] %s4222_s12 }
  0xe9   : > { %3448 = vmatpush3.msra.mxu0 %v742_v32  ;;  %1006 = vmatpush1.msra.mxu1 %v930_v44  ;;  %v2006_v32 = vsel %vm2005_vm1, 1.0, %v4312_v0  ;;  %s4224_s22 = scalar_lea.vmem %s4223_s12, 768  ;;  %p4225_p1 = scmp.lt.s32.totalorder %s5383_s26, %s4223_s12 }
  0xea   : > { %3450 = vmatmul.mubr.msk.f32.vlgmr.msra.gmra.mxu0 %vm758_vm2, %v751_v34  ;;  %3452 = vmatprep.subr.mxu0 %v4312_v0  ;;  %vm2220_vm2 = vmand %vm2218_vm11, %vm2219_vm12  ;;  %p4226_p4 = scmp.lt.s32.totalorder %s4224_s22, %s4218_s10 }
  0xeb   : > { %3453 = vmatpush3.msra.mxu0 %v835_v35  ;;  %3460 = vmatprep.mubr.msk.f32.mxu0 %vm4313_vm0, %v4312_v0  ;;  %v2221_v33 = vsel %vm2220_vm2, 1.0, %v4312_v0 }
  0xec   : > { %3454 = vmatprep.subr.mxu0 %v4312_v0  ;;  %1007 = vmatprep.subr.mxu1 %v928_v47  ;;  %p4227_p8 = por %p4226_p4, %p4225_p1 }
  0xed   : > { %3455 = vmatpush3.msra.mxu0 %v834_v37  ;;  %1008 = vmatpush1.msra.mxu1 %v927_v48 }
  0xee   : > { %3456 = vmatprep.subr.mxu0 %v4312_v0  ;;  %1009 = vmatprep.subr.mxu1 %v925_v50  ;;  %p4228_p5 = pnand %p4227_p8, %p4221_p2 }
  0xef   : > { %3457 = vmatpush3.msra.mxu0 %v833_v40  ;;  %1010 = vmatpush1.msra.mxu1 %v924_v51 }
  0xf0   : > { %3458 = vmatprep.subr.mxu0 %v4312_v0  ;;  %1011 = vmatprep.subr.mxu1 %v922_v53 }
  0xf1   : > { %3459 = vmatpush3.msra.mxu0 %v832_v43  ;;  %1012 = vmatpush1.msra.mxu1 %v921_v2 }
  0xf2   : > { %3461 = vmatmul.mubr.msk.f32.vlgmr.msra.gmra.mxu0 %vm844_vm3, %v837_v45  ;;  %3463 = vmatprep.subr.mxu0 %v4312_v0  ;;  %vm2435_vm3 = vmand %vm2433_vm14, %vm2434_vm15 }
  0xf3   : > { %3464 = vmatpush3.msra.mxu0 %v965_v46  ;;  %3495 = vmatprep.mubr.msk.f32.mxu0 %vm4313_vm0, %v4312_v0  ;;  %v2436_v34 = vsel %vm2435_vm3, 1.0, %v4312_v0 }
  0xf4   : > { %3465 = vmatprep.subr.mxu0 %v4312_v0  ;;  %1013 = vmatprep.subr.mxu1 %v919_v4 }
  0xf5   : > { %3466 = vmatpush3.msra.mxu0 %v962_v49  ;;  %1014 = vmatpush1.msra.mxu1 %v918_v5 }
  0xf6   : > { %3467 = vmatprep.subr.mxu0 %v4312_v0  ;;  %3504 = vmatprep.subr.mxu1 %v4312_v0 }
  0xf7   : > { %3468 = vmatpush3.msra.mxu0 %v959_v52 }
  0xf8   : > { %3469 = vmatprep.subr.mxu0 %v4312_v0 }
  0xf9   : > { %3470 = vmatpush3.msra.mxu0 %v956_v54 }
  0xfa   : > { %3471 = vmatprep.subr.mxu0 %v4312_v0 }
  0xfb   : > { %3472 = vmatpush3.msra.mxu0 %v953_v55 }
  0xfc   : > { %3473 = vmatprep.subr.mxu0 %v4312_v0 }
  0xfd   : > { %3474 = vmatpush3.msra.mxu0 %v950_v56 }
  0xfe   : > { %3475 = vmatprep.subr.mxu0 %v4312_v0 }
  0xff   : > { %3476 = vmatpush3.msra.mxu0 %v947_v57 }
 0x100   : > { %3477 = vmatprep.subr.mxu0 %v4312_v0 }
 0x101   : > { %3478 = vmatpush3.msra.mxu0 %v944_v58 }
 0x102   : > { %3479 = vmatprep.subr.mxu0 %v4312_v0 }
 0x103   : > { %3480 = vmatpush3.msra.mxu0 %v941_v59 }
 0x104   : > { %3481 = vmatprep.subr.mxu0 %v4312_v0 }
 0x105   : > { %3482 = vmatpush3.msra.mxu0 %v938_v60 }
 0x106   : > { %3483 = vmatprep.subr.mxu0 %v4312_v0 }
 0x107   : > { %3484 = vmatpush3.msra.mxu0 %v935_v61 }
 0x108   : > { %3485 = vmatprep.subr.mxu0 %v4312_v0 }
 0x109   : > { %3486 = vmatpush3.msra.mxu0 %v932_v62 }
 0x10a   : > { %3487 = vmatprep.subr.mxu0 %v4312_v0 }
 0x10b   : > { %3488 = vmatpush3.msra.mxu0 %v929_v63 }
 0x10c   : > { %3489 = vmatprep.subr.mxu0 %v4312_v0 }
 0x10d   : > { %3490 = vmatpush3.msra.mxu0 %v926_v1 }
 0x10e   : > { %3491 = vmatprep.subr.mxu0 %v4312_v0 }
 0x10f   : > { %3492 = vmatpush3.msra.mxu0 %v923_v3 }
 0x110   : > { %3493 = vmatprep.subr.mxu0 %v4312_v0 }
 0x111   : > { %3494 = vmatpush3.msra.mxu0 %v920_v6 }
 0x112   : > { %3519 = vmatprep.subr.mxu0 %v4312_v0 }
 0x19a   : > { %v738_v8 = vpop.f32.mrf.mxu0 }
 0x19b   : > { %v4707_v9 = vadd.f32 %v3227_v7, %v738_v8 }
 0x19c   : > { %v3432_v10 = vpop.f32.mrf.mxu0 }
 0x19d   : > { %1048 = vmatmul.mubr.f32.vlgmr.msra.gmra.mxu1 %v4707_v9  ;;  %3496 = vmatmul.mubr.f32.vlgmr.msra.gmra.mxu0 %v4707_v9 }
 0x19e   : > { %1053 = vmatprep.mubr.f32.mxu1 %v4312_v0  ;;  %3498 = vmatprep.mubr.msk.f32.mxu0 %vm4313_vm0, %v4312_v0 }
 0x1aa   : > { %v828_v12 = vpop.f32.mrf.mxu0 }
 0x1ab   : > { %v4717_v13 = vadd.f32 %v3229_v11, %v828_v12 }
 0x1ac   : > { %v3451_v14 = vpop.f32.mrf.mxu0 }
 0x1ad   : > { %1054 = vmatmul.mubr.f32.gmra.mxu1 %v4717_v13  ;;  %3499 = vmatmul.mubr.f32.gmra.mxu0 %v4717_v13  ;;  %v1151_v14 = vsel %vm1149_vm7, 1.0, %v4312_v0 }
 0x1ae   : > { %1059 = vmatprep.mubr.f32.mxu1 %v4312_v0  ;;  %3501 = vmatprep.mubr.msk.f32.mxu0 %vm4313_vm0, %v4312_v0 }
 0x1b2   : > { %v914_v16 = vpop.f32.mrf.mxu0 }
 0x1b3   : > { %v4727_v17 = vadd.f32 %v3231_v15, %v914_v16  ;;  %v1275_v15 = vsel %vm1274_vm8, 1.0, %v4312_v0 }
 0x1b4   : > { %v3462_v18 = vpop.f32.mrf.mxu0 }
 0x1b5   : > { %1060 = vmatmul.mubr.f32.gmra.mxu1 %v4727_v17  ;;  %3502 = vmatmul.mubr.f32.gmra.mxu0 %v4727_v17 }
 0x1b6   : > { %3510 = vmatprep.mubr.msk.f32.mxu1 %vm4313_vm0, %v4312_v0  ;;  %3525 = vmatprep.mubr.msk.f32.mxu0 %vm4313_vm0, %v4312_v0 }
 0x25d   : > { %v4758_v27 = vpop.f32.mrf.mxu1  ;;  %v1132_v28 = vpop.f32.mrf.mxu0 }
 0x25e   : > { %v4763_v31 = vadd.f32 %v1132_v28, %v979_v25 }
 0x25f   : > { %v1051_v35 = vpop.f32.mrf.mxu1  ;;  %v3497_v36 = vpop.f32.mrf.mxu0 }
 0x260   : > { %v4768_v37 = vadd.f32 %v1051_v35, %v975_v26  ;;  %v4772_v39 = vmul.f32 %v1576_v29, %v4763_v31  ;;  %v4775_v40 = vmul.f32 %v1791_v30, %v4763_v31  ;;  %v4778_v41 = vmul.f32 %v2006_v32, %v4763_v31 }
 0x261   : > { %v4781_v42 = vmul.f32 %v2221_v33, %v4763_v31  ;;  %v4784_v43 = vmul.f32 %v2436_v34, %v4763_v31  ;;  %v4805_v50 = vmul.f32 %v2651_v38, %v4763_v31 }
 0x262   : > { %v4787_v44 = vmul.f32 %v1576_v29, %v4768_v37  ;;  %v4790_v45 = vmul.f32 %v1791_v30, %v4768_v37  ;;  %v4793_v46 = vmul.f32 %v2006_v32, %v4768_v37  ;;  %v4796_v47 = vmul.f32 %v2221_v33, %v4768_v37 }
 0x263   : > { %v4799_v48 = vmul.f32 %v2436_v34, %v4768_v37  ;;  %v4802_v49 = vmul.f32 %v2651_v38, %v4768_v37 }
 0x26d   : > { %v4807_v51 = vpop.f32.mrf.mxu1  ;;  %v1137_v52 = vpop.f32.mrf.mxu0 }
 0x26e   : > { %v4809_v53 = vadd.f32 %v1137_v52, %v979_v25 }
 0x26f   : > { %v1057_v54 = vpop.f32.mrf.mxu1  ;;  %v3500_v55 = vpop.f32.mrf.mxu0 }
 0x270   : > { %v1058_v56 = vadd.f32 %v1057_v54, %v975_v26  ;;  %v4812_v57 = vmul.f32 %v1576_v29, %v4809_v53  ;;  %v4815_v58 = vmul.f32 %v1791_v30, %v4809_v53  ;;  %v4818_v59 = vmul.f32 %v2006_v32, %v4809_v53 }
 0x271   : > { %v4821_v60 = vmul.f32 %v2221_v33, %v4809_v53  ;;  %v4824_v61 = vmul.f32 %v2436_v34, %v4809_v53  ;;  %v4841_v5 = vmul.f32 %v2651_v38, %v4809_v53 }
 0x272   : > { %v4828_v62 = vmul.f32 %v1576_v29, %v1058_v56  ;;  %v4830_v63 = vmul.f32 %v1791_v30, %v1058_v56  ;;  %v4832_v1 = vmul.f32 %v2006_v32, %v1058_v56  ;;  %v4834_v2 = vmul.f32 %v2221_v33, %v1058_v56 }
 0x273   : > { %v4836_v3 = vmul.f32 %v2436_v34, %v1058_v56  ;;  %v4838_v4 = vmul.f32 %v2651_v38, %v1058_v56 }
 0x275   : > { %v4843_v6 = vpop.f32.mrf.mxu1  ;;  %v1142_v7 = vpop.f32.mrf.mxu0 }
 0x276   : > { %v1143_v8 = vadd.f32 %v1142_v7, %v979_v25  ;;  %v970_v7 = vsub.s32 0, %v4737_v21 }
 0x277   : > { %v1063_v10 = vpop.f32.mrf.mxu1  ;;  %v3503_v11 = vpop.f32.mrf.mxu0 }
 0x278   : > { %v1064_v12 = vadd.f32 %v1063_v10, %v975_v26  ;;  %v4848_v16 = vmul.f32 %v1576_v29, %v1143_v8  ;;  %v4850_v18 = vmul.f32 %v1791_v30, %v1143_v8  ;;  %v4852_v19 = vmul.f32 %v2006_v32, %v1143_v8 }
 0x279   : > { %v4854_v22 = vmul.f32 %v2221_v33, %v1143_v8  ;;  %v4856_v24 = vmul.f32 %v2436_v34, %v1143_v8  ;;  %v4870_v55 = vmul.f32 %v2651_v38, %v1143_v8  ;;  %v1155_v10 = vmul.f32 %v1151_v14, %v4763_v31 }
 0x27a   : > { %v1154_v20 = vmul.f32 %v1151_v14, %v1064_v12  ;;  %v1278_v28 = vmul.f32 %v1275_v15, %v1064_v12  ;;  %v4858_v25 = vmul.f32 %v1576_v29, %v1064_v12  ;;  %v4860_v35 = vmul.f32 %v1791_v30, %v1064_v12 }
 0x27b   : > { %v4862_v26 = vmul.f32 %v2006_v32, %v1064_v12  ;;  %v4864_v36 = vmul.f32 %v2221_v33, %v1064_v12  ;;  %v4866_v52 = vmul.f32 %v2436_v34, %v1064_v12  ;;  %v4868_v54 = vmul.f32 %v2651_v38, %v1064_v12 }
 0x27c   : > { %3505 = vmatpush3.xpose.msra.mxu1 %v1154_v20  ;;  %3520 = vmatpush3.xpose.msra.mxu0 %v1278_v28  ;;  %v1153_v29 = vmul.f32 %v1151_v14, %v1058_v56  ;;  %v1277_v30 = vmul.f32 %v1275_v15, %v1058_v56  ;;  %v971_v32 = vrot.slane %v4749_v23, %v970_v7 }
 0x27d   : > { %3506 = vmatprep.subr.mxu1 %v4312_v0  ;;  %3521 = vmatprep.subr.mxu0 %v4312_v0  ;;  %v1152_v33 = vmul.f32 %v1151_v14, %v4768_v37  ;;  %v1276_v34 = vmul.f32 %v1275_v15, %v4768_v37  ;;  %v1281_v38 = vmul.f32 %v1275_v15, %v1143_v8 }
 0x27e   : > { %v4881_v21 = vadd.f32 %v4758_v27, %v971_v32  ;;  %v1157_v56 = vmul.f32 %v1151_v14, %v1143_v8  ;;  %v1280_v23 = vmul.f32 %v1275_v15, %v4809_v53  ;;  %v1156_v27 = vmul.f32 %v1151_v14, %v4809_v53 }
 0x27f   : > { %v4892_v37 = vadd.f32 %v4807_v51, %v971_v32  ;;  %v1279_v8 = vmul.f32 %v1275_v15, %v4763_v31  ;;  %v4905_v51 = vadd.f32 %v4843_v6, %v971_v32 }
 0x280   : > { %3507 = vmatpush3.xpose.msra.mxu1 %v1153_v29  ;;  %3522 = vmatpush3.xpose.msra.mxu0 %v1277_v30 }
 0x281   : > { %3508 = vmatprep.subr.mxu1 %v4312_v0  ;;  %3523 = vmatprep.subr.mxu0 %v4312_v0 }
 0x284   : > { %3509 = vmatpush3.xpose.msra.mxu1 %v1152_v33  ;;  %3524 = vmatpush3.xpose.msra.mxu0 %v1276_v34 }
 0x285   : > { %3534 = vmatprep.subr.mxu1 %v4312_v0  ;;  %3549 = vmatprep.subr.mxu0 %v4312_v0 }
 0x287   : > { %3511 = vmatmul.mubr.f32.vlgmr.msra.gmra.mxu1 %v4881_v21  ;;  %3526 = vmatmul.mubr.f32.vlgmr.msra.gmra.mxu0 %v4881_v21 }
 0x288   : > { %3535 = vmatpush3.msra.mxu1 %v1281_v38  ;;  %3550 = vmatpush3.msra.mxu0 %v1157_v56 }
 0x289   : > { %3536 = vmatprep.subr.mxu1 %v4312_v0  ;;  %3551 = vmatprep.subr.mxu0 %v4312_v0 }
 0x28a   : > { %3513 = vmatprep.mubr.msk.f32.mxu1 %vm4313_vm0, %v4312_v0  ;;  %3528 = vmatprep.mubr.msk.f32.mxu0 %vm4313_vm0, %v4312_v0 }
 0x28b   : > { %3537 = vmatpush3.msra.mxu1 %v1280_v23  ;;  %3552 = vmatpush3.msra.mxu0 %v1156_v27 }
 0x28c   : > { %3514 = vmatmul.mubr.f32.gmra.mxu1 %v4892_v37  ;;  %3529 = vmatmul.mubr.f32.gmra.mxu0 %v4892_v37 }
 0x28d   : > { %3538 = vmatprep.subr.mxu1 %v4312_v0  ;;  %3553 = vmatprep.subr.mxu0 %v4312_v0 }
 0x28e   : > { %3539 = vmatpush3.msra.mxu1 %v1279_v8  ;;  %3554 = vmatpush3.msra.mxu0 %v1155_v10 }
 0x28f   : > { %3516 = vmatprep.mubr.msk.f32.mxu1 %vm4313_vm0, %v4312_v0  ;;  %3531 = vmatprep.mubr.msk.f32.mxu0 %vm4313_vm0, %v4312_v0 }
 0x290   : > { %3517 = vmatmul.mubr.f32.gmra.mxu1 %v4905_v51  ;;  %3532 = vmatmul.mubr.f32.gmra.mxu0 %v4905_v51 }
 0x291   : > { %3540 = vmatprep.mubr.msk.f32.mxu1 %vm4313_vm0, %v4312_v0  ;;  %3564 = vmatprep.subr.mxu1 %v4312_v0 }
 0x292   : > { %3555 = vmatprep.mubr.msk.f32.mxu0 %vm4313_vm0, %v4312_v0  ;;  %3579 = vmatprep.subr.mxu0 %v4312_v0 }
 0x347   : > { %v4919_v31 = vpop.f32.mrf.mxu1  ;;  %v1348_v53 = vpop.f32.mrf.mxu0 }
 0x348   : > { %v1362_v6 = vsel %vm1238_vm9, %v1348_v53, -inf }
 0x349   : > { %v3512_v11 = vpop.f32.mrf.mxu1  ;;  %1363 = vmax.xlane.f32.xlu0 %v1362_v6  ;;  %v3527_v12 = vpop.f32.mrf.mxu0 }
 0x34c   : > { %v4922_v14 = vpop.f32.mrf.mxu1  ;;  %v1353_v15 = vpop.f32.mrf.mxu0 }
 0x34d   : > { %v1365_v20 = vsel %vm1238_vm9, %v1353_v15, -inf }
 0x34e   : > { %v3515_v28 = vpop.f32.mrf.mxu1  ;;  %1366 = vmax.xlane.f32.xlu0 %v1365_v20  ;;  %v3530_v7 = vpop.f32.mrf.mxu0 }
 0x350   : > { %v4925_v29 = vpop.f32.mrf.mxu1  ;;  %v1358_v30 = vpop.f32.mrf.mxu0 }
 0x351   : > { %v1368_v32 = vsel %vm1238_vm9, %v1358_v30, -inf }
 0x352   : > { %v3518_v33 = vpop.f32.mrf.mxu1  ;;  %1369 = vmax.xlane.f32.xlu1 %v1368_v32  ;;  %v3533_v34 = vpop.f32.mrf.mxu0 }
 0x353   : > { %v1242_v34 = vsel %vm1238_vm9, %v4922_v14, -inf }
 0x3d2   : > { %v1364_v38 = vpop.xlane.xlu0 %1363 }
 0x3d3   : > { %v1371_v56 = vsub.f32 %v1348_v53, %v1364_v38  ;;  %v1239_v53 = vsel %vm1238_vm9, %v4919_v31, -inf }
 0x3d5   : > { %v1374_v23 = vmul.f32 1.442695, %v1371_v56 }
 0x3d7   : > { %3902 = vpow2.f32 %v1374_v23  ;;  %v1367_v27 = vpop.xlane.xlu0 %1366 }
 0x3d8   : > { %v1372_v8 = vsub.f32 %v1353_v15, %v1367_v27 }
 0x3da   : > { %v1376_v10 = vmul.f32 1.442695, %v1372_v8 }
 0x3db   : > { %v1370_v6 = vpop.xlane.xlu1 %1369 }
 0x3dc   : > { %3904 = vpow2.f32 %v1376_v10  ;;  %v1373_v11 = vsub.f32 %v1358_v30, %v1370_v6  ;;  %v1245_v30 = vsel %vm1238_vm9, %v4925_v29, -inf }
 0x3de   : > { %v1378_v12 = vmul.f32 1.442695, %v1373_v11 }
 0x3e0   : > { %3906 = vpow2.f32 %v1378_v12 }
 0x3e4   : > { %v3903_v20 = vpop.eup %3902 }
 0x3e5   : > { %v1380_v28 = vsel %vm1238_vm9, %v3903_v20, 0.0 }
 0x3e6   : > { %1381 = vadd.xlane.f32.xlu1 %v1380_v28 }
 0x3e9   : > { %v3905_v7 = vpop.eup %3904 }
 0x3ea   : > { %v1383_v32 = vsel %vm1238_vm9, %v3905_v7, 0.0 }
 0x3eb   : > { %1384 = vadd.xlane.f32.xlu0 %v1383_v32 }
 0x3ed   : > { %v3907_v33 = vpop.eup %3906 }
 0x3ee   : > { %v1386_v15 = vsel %vm1238_vm9, %v3907_v33, 0.0 }
 0x3ef   : > { %1240 = vmax.xlane.f32.xlu0 %v1239_v53  ;;  %1387 = vadd.xlane.f32.xlu1 %v1386_v15 }
 0x3f3   : > { %1246 = vmax.xlane.f32.xlu0 %v1245_v30  ;;  %1243 = vmax.xlane.f32.xlu1 %v1242_v34 }
 0x46f   : > { %v1382_v38 = vpop.xlane.xlu1 %1381 }
 0x470   : > { %3908 = vrcp.f32 %v1382_v38 }
 0x474   : > { %v1385_v56 = vpop.xlane.xlu0 %1384 }
 0x475   : > { %3910 = vrcp.f32 %v1385_v56 }
 0x478   : > { %v1388_v23 = vpop.xlane.xlu1 %1387 }
 0x479   : > { %3912 = vrcp.f32 %v1388_v23 }
 0x47d   : > { %v3909_v27 = vpop.eup %3908 }
 0x47e   : > { %v1392_v8 = vmul.f32 %v3909_v27, %v3903_v20 }
 0x480   : > { %3541 = vmatmul.mubr.msk.f32.vlgmr.msra.gmra.mxu1 %vm1238_vm9, %v1392_v8 }
 0x481   : > { %3565 = vmatpush3.xpose.msra.mxu1 %v4858_v25  ;;  %3543 = vmatprep.mubr.msk.f32.mxu1 %vm4313_vm0, %v4312_v0 }
 0x482   : > { %v3911_v10 = vpop.eup %3910  ;;  %3566 = vmatprep.subr.mxu1 %v4312_v0 }
 0x483   : > { %v1393_v6 = vmul.f32 %v3911_v10, %v3905_v7 }
 0x485   : > { %3544 = vmatmul.mubr.msk.f32.gmra.mxu1 %vm1238_vm9, %v1393_v6  ;;  %v1241_v6 = vpop.xlane.xlu0 %1240 }
 0x486   : > { %v3913_v11 = vpop.eup %3912  ;;  %3567 = vmatpush3.xpose.msra.mxu1 %v4828_v62  ;;  %3546 = vmatprep.mubr.msk.f32.mxu1 %vm4313_vm0, %v4312_v0 }
 0x487   : > { %3568 = vmatprep.subr.mxu1 %v4312_v0  ;;  %v1394_v12 = vmul.f32 %v3913_v11, %v3907_v33 }
 0x489   : > { %3547 = vmatmul.mubr.msk.f32.gmra.mxu1 %vm1238_vm9, %v1394_v12 }
 0x48a   : > { %3569 = vmatpush3.xpose.msra.mxu1 %v4787_v44  ;;  %3570 = vmatprep.mubr.msk.f32.mxu1 %vm4313_vm0, %v4312_v0 }
 0x48b   : > { %3594 = vmatprep.subr.mxu1 %v4312_v0 }
 0x48d   : > { %3571 = vmatmul.mubr.f32.vlgmr.msra.gmra.mxu1 %v4881_v21 }
 0x48e   : > { %3595 = vmatpush3.xpose.msra.mxu1 %v4860_v35  ;;  %3573 = vmatprep.mubr.msk.f32.mxu1 %vm4313_vm0, %v4312_v0 }
 0x48f   : > { %3596 = vmatprep.subr.mxu1 %v4312_v0 }
 0x491   : > { %3574 = vmatmul.mubr.f32.gmra.mxu1 %v4892_v37 }
 0x492   : > { %3597 = vmatpush3.xpose.msra.mxu1 %v4830_v63  ;;  %3576 = vmatprep.mubr.msk.f32.mxu1 %vm4313_vm0, %v4312_v0 }
 0x493   : > { %3598 = vmatprep.subr.mxu1 %v4312_v0 }
 0x495   : > { %3577 = vmatmul.mubr.f32.gmra.mxu1 %v4905_v51 }
 0x496   : > { %3599 = vmatpush3.xpose.msra.mxu1 %v4790_v45  ;;  %3600 = vmatprep.mubr.msk.f32.mxu1 %vm4313_vm0, %v4312_v0 }
 0x497   : > { %3624 = vmatprep.subr.mxu1 %v4312_v0 }
 0x499   : > { %3601 = vmatmul.mubr.f32.vlgmr.msra.gmra.mxu1 %v4881_v21 }
 0x49a   : > { %3625 = vmatpush3.xpose.msra.mxu1 %v4862_v26  ;;  %3603 = vmatprep.mubr.msk.f32.mxu1 %vm4313_vm0, %v4312_v0 }
 0x49b   : > { %3626 = vmatprep.subr.mxu1 %v4312_v0 }
 0x49d   : > { %3604 = vmatmul.mubr.f32.gmra.mxu1 %v4892_v37 }
 0x49e   : > { %3627 = vmatpush3.xpose.msra.mxu1 %v4832_v1  ;;  %3606 = vmatprep.mubr.msk.f32.mxu1 %vm4313_vm0, %v4312_v0 }
 0x49f   : > { %3628 = vmatprep.subr.mxu1 %v4312_v0 }
 0x4a1   : > { %3607 = vmatmul.mubr.f32.gmra.mxu1 %v4905_v51 }
 0x4a2   : > { %3629 = vmatpush3.xpose.msra.mxu1 %v4793_v46  ;;  %3630 = vmatprep.mubr.msk.f32.mxu1 %vm4313_vm0, %v4312_v0 }
 0x4a3   : > { %3654 = vmatprep.subr.mxu1 %v4312_v0 }
 0x4a5   : > { %3631 = vmatmul.mubr.f32.vlgmr.msra.gmra.mxu1 %v4881_v21 }
 0x4a6   : > { %3655 = vmatpush3.xpose.msra.mxu1 %v4864_v36  ;;  %3633 = vmatprep.mubr.msk.f32.mxu1 %vm4313_vm0, %v4312_v0 }
 0x4a7   : > { %3656 = vmatprep.subr.mxu1 %v4312_v0 }
 0x4a9   : > { %3634 = vmatmul.mubr.f32.gmra.mxu1 %v4892_v37 }
 0x4aa   : > { %3657 = vmatpush3.xpose.msra.mxu1 %v4834_v2  ;;  %3636 = vmatprep.mubr.msk.f32.mxu1 %vm4313_vm0, %v4312_v0 }
 0x4ab   : > { %3658 = vmatprep.subr.mxu1 %v4312_v0 }
 0x4ad   : > { %3637 = vmatmul.mubr.f32.gmra.mxu1 %v4905_v51 }
 0x4ae   : > { %3659 = vmatpush3.xpose.msra.mxu1 %v4796_v47  ;;  %3660 = vmatprep.mubr.msk.f32.mxu1 %vm4313_vm0, %v4312_v0 }
 0x4af   : > { %3684 = vmatprep.subr.mxu1 %v4312_v0 }
 0x4b1   : > { %3661 = vmatmul.mubr.f32.vlgmr.msra.gmra.mxu1 %v4881_v21 }
 0x4b2   : > { %3685 = vmatpush3.xpose.msra.mxu1 %v4866_v52  ;;  %3663 = vmatprep.mubr.msk.f32.mxu1 %vm4313_vm0, %v4312_v0 }
 0x4b3   : > { %3686 = vmatprep.subr.mxu1 %v4312_v0 }
 0x4b5   : > { %3664 = vmatmul.mubr.f32.gmra.mxu1 %v4892_v37 }
 0x4b6   : > { %3687 = vmatpush3.xpose.msra.mxu1 %v4836_v3  ;;  %3666 = vmatprep.mubr.msk.f32.mxu1 %vm4313_vm0, %v4312_v0 }
 0x4b7   : > { %3688 = vmatprep.subr.mxu1 %v4312_v0 }
 0x4b9   : > { %3667 = vmatmul.mubr.f32.gmra.mxu1 %v4905_v51 }
 0x4ba   : > { %3689 = vmatpush3.xpose.msra.mxu1 %v4799_v48  ;;  %3690 = vmatprep.mubr.msk.f32.mxu1 %vm4313_vm0, %v4312_v0 }
 0x4bb   : > { %3714 = vmatprep.subr.mxu1 %v4312_v0 }
 0x4bd   : > { %3691 = vmatmul.mubr.f32.vlgmr.msra.gmra.mxu1 %v4881_v21 }
 0x4be   : > { %3715 = vmatpush3.xpose.msra.mxu1 %v4868_v54  ;;  %3693 = vmatprep.mubr.msk.f32.mxu1 %vm4313_vm0, %v4312_v0 }
 0x4bf   : > { %3716 = vmatprep.subr.mxu1 %v4312_v0 }
 0x4c1   : > { %3694 = vmatmul.mubr.f32.gmra.mxu1 %v4892_v37 }
 0x4c2   : > { %3717 = vmatpush3.xpose.msra.mxu1 %v4838_v4  ;;  %3696 = vmatprep.mubr.msk.f32.mxu1 %vm4313_vm0, %v4312_v0 }
 0x4c3   : > { %3718 = vmatprep.subr.mxu1 %v4312_v0 }
 0x4c5   : > { %3697 = vmatmul.mubr.f32.gmra.mxu1 %v4905_v51 }
 0x4c6   : > { %3719 = vmatpush3.xpose.msra.mxu1 %v4802_v49  ;;  %3720 = vmatprep.mubr.msk.f32.mxu1 %vm4313_vm0, %v4312_v0 }
 0x4c7   : > { %3744 = vmatprep.subr.mxu1 %v4312_v0 }
 0x4c9   : > { %3721 = vmatmul.mubr.f32.vlgmr.msra.gmra.mxu1 %v4881_v21 }
 0x4ca   : > { %3723 = vmatprep.mubr.msk.f32.mxu1 %vm4313_vm0, %v4312_v0 }
 0x4cd   : > { %3724 = vmatmul.mubr.f32.gmra.mxu1 %v4892_v37 }
 0x4ce   : > { %3726 = vmatprep.mubr.msk.f32.mxu1 %vm4313_vm0, %v4312_v0 }
 0x4d1   : > { %3727 = vmatmul.mubr.f32.gmra.mxu1 %v4905_v51 }
 0x4d2   : > { %3776 = vmatprep.mubr.msk.f32.mxu1 %vm4313_vm0, %v4312_v0 }
 0x540   : > { %v5036_v44 = vpop.f32.mrf.mxu1 }
 0x542   : > { %v3542_v45 = vpop.f32.mrf.mxu1 }
 0x545   : > { %v5038_v46 = vpop.f32.mrf.mxu1 }
 0x547   : > { %v3545_v47 = vpop.f32.mrf.mxu1 }
 0x549   : > { %v5040_v48 = vpop.f32.mrf.mxu1 }
 0x54b   : > { %v3548_v49 = vpop.f32.mrf.mxu1 }
 0x54c   : > { %v1248_v49 = vsub.f32 %v4919_v31, %v1241_v6 }
 0x54d   : > { %v5042_v62 = vpop.f32.mrf.mxu1 }
 0x54e   : > { %v1663_v63 = vsel %vm1238_vm9, %v5042_v62, -inf }
 0x54f   : > { %1664 = vmax.xlane.f32.xlu1 %v1663_v63  ;;  %v3572_v1 = vpop.f32.mrf.mxu1  ;;  %v1247_v63 = vpop.xlane.xlu0 %1246 }
 0x551   : > { %v5046_v2 = vpop.f32.mrf.mxu1 }
 0x552   : > { %v1666_v3 = vsel %vm1238_vm9, %v5046_v2, -inf }
 0x553   : > { %1667 = vmax.xlane.f32.xlu0 %v1666_v3  ;;  %v3575_v4 = vpop.f32.mrf.mxu1  ;;  %v1244_v3 = vpop.xlane.xlu1 %1243 }
 0x555   : > { %v5050_v25 = vpop.f32.mrf.mxu1 }
 0x556   : > { %v1669_v35 = vsel %vm1238_vm9, %v5050_v25, -inf }
 0x557   : > { %1670 = vmax.xlane.f32.xlu1 %v1669_v35  ;;  %v3578_v26 = vpop.f32.mrf.mxu1  ;;  %v1250_v35 = vsub.f32 %v4925_v29, %v1247_v63 }
 0x559   : > { %v5054_v36 = vpop.f32.mrf.mxu1  ;;  %v1255_v31 = vmul.f32 1.442695, %v1250_v35 }
 0x55a   : > { %v1878_v52 = vsel %vm1238_vm9, %v5054_v36, -inf }
 0x55b   : > { %1879 = vmax.xlane.f32.xlu0 %v1878_v52  ;;  %v3602_v54 = vpop.f32.mrf.mxu1  ;;  %v1251_v52 = vmul.f32 1.442695, %v1248_v49 }
 0x55c   : > { %v1249_v54 = vsub.f32 %v4922_v14, %v1244_v3 }
 0x55d   : > { %v5058_v21 = vpop.f32.mrf.mxu1  ;;  %3914 = vpow2.f32 %v1251_v52 }
 0x55e   : > { %v1881_v37 = vsel %vm1238_vm9, %v5058_v21, -inf  ;;  %3916 = vpow2.f32 %v1255_v31 }
 0x55f   : > { %1882 = vmax.xlane.f32.xlu1 %v1881_v37  ;;  %v3605_v51 = vpop.f32.mrf.mxu1 }
 0x561   : > { %v5062_v20 = vpop.f32.mrf.mxu1 }
 0x562   : > { %v1884_v28 = vsel %vm1238_vm9, %v5062_v20, -inf }
 0x563   : > { %1885 = vmax.xlane.f32.xlu0 %v1884_v28  ;;  %v3608_v7 = vpop.f32.mrf.mxu1 }
 0x564   : > { %v1253_v7 = vmul.f32 1.442695, %v1249_v54 }
 0x565   : > { %v5066_v32 = vpop.f32.mrf.mxu1 }
 0x566   : > { %v2093_v33 = vsel %vm1238_vm9, %v5066_v32, -inf  ;;  %3918 = vpow2.f32 %v1253_v7 }
 0x567   : > { %2094 = vmax.xlane.f32.xlu1 %v2093_v33  ;;  %v3632_v53 = vpop.f32.mrf.mxu1 }
 0x569   : > { %v5070_v15 = vpop.f32.mrf.mxu1 }
 0x56a   : > { %v2096_v30 = vsel %vm1238_vm9, %v5070_v15, -inf  ;;  %v5113_v6 = vpop.eup %3914 }
 0x56b   : > { %2097 = vmax.xlane.f32.xlu0 %v2096_v30  ;;  %v3635_v34 = vpop.f32.mrf.mxu1  ;;  %v5117_v49 = vpop.eup %3916  ;;  %v1257_v63 = vsel %vm1238_vm9, %v5113_v6, 0.0 }
 0x56c   : > { %v1263_v35 = vsel %vm1238_vm9, %v5117_v49, 0.0 }
 0x56d   : > { %v5074_v38 = vpop.f32.mrf.mxu1 }
 0x56e   : > { %v2099_v56 = vsel %vm1238_vm9, %v5074_v38, -inf }
 0x56f   : > { %2100 = vmax.xlane.f32.xlu1 %v2099_v56  ;;  %v3638_v23 = vpop.f32.mrf.mxu1 }
 0x571   : > { %v5078_v27 = vpop.f32.mrf.mxu1 }
 0x572   : > { %v2308_v8 = vsel %vm1238_vm9, %v5078_v27, -inf }
 0x573   : > { %2309 = vmax.xlane.f32.xlu0 %v2308_v8  ;;  %v3662_v10 = vpop.f32.mrf.mxu1  ;;  %v5123_v3 = vpop.eup %3918 }
 0x574   : > { %v1260_v52 = vsel %vm1238_vm9, %v5123_v3, 0.0 }
 0x575   : > { %v5082_v11 = vpop.f32.mrf.mxu1 }
 0x576   : > { %v2311_v12 = vsel %vm1238_vm9, %v5082_v11, -inf }
 0x577   : > { %2312 = vmax.xlane.f32.xlu1 %v2311_v12  ;;  %v3665_v45 = vpop.f32.mrf.mxu1 }
 0x579   : > { %v5086_v47 = vpop.f32.mrf.mxu1 }
 0x57a   : > { %v2314_v1 = vsel %vm1238_vm9, %v5086_v47, -inf }
 0x57b   : > { %2315 = vmax.xlane.f32.xlu0 %v2314_v1  ;;  %v3668_v4 = vpop.f32.mrf.mxu1 }
 0x57d   : > { %v5092_v26 = vpop.f32.mrf.mxu1 }
 0x57e   : > { %v2523_v37 = vsel %vm1238_vm9, %v5092_v26, -inf }
 0x57f   : > { %2524 = vmax.xlane.f32.xlu1 %v2523_v37  ;;  %v3692_v51 = vpop.f32.mrf.mxu1 }
 0x581   : > { %v5097_v28 = vpop.f32.mrf.mxu1 }
 0x582   : > { %v2526_v33 = vsel %vm1238_vm9, %v5097_v28, -inf }
 0x583   : > { %2527 = vmax.xlane.f32.xlu0 %v2526_v33  ;;  %v3695_v29 = vpop.f32.mrf.mxu1 }
 0x585   : > { %v5101_v53 = vpop.f32.mrf.mxu1 }
 0x586   : > { %v2529_v14 = vsel %vm1238_vm9, %v5101_v53, -inf }
 0x587   : > { %2530 = vmax.xlane.f32.xlu1 %v2529_v14  ;;  %v3698_v30 = vpop.f32.mrf.mxu1 }
 0x589   : > { %v5105_v34 = vpop.f32.mrf.mxu1 }
 0x58a   : > { %v2738_v56 = vsel %vm1238_vm9, %v5105_v34, -inf }
 0x58b   : > { %2739 = vmax.xlane.f32.xlu0 %v2738_v56  ;;  %v3722_v23 = vpop.f32.mrf.mxu1 }
 0x58d   : > { %v5109_v8 = vpop.f32.mrf.mxu1 }
 0x58e   : > { %v2741_v10 = vsel %vm1238_vm9, %v5109_v8, -inf }
 0x58f   : > { %2742 = vmax.xlane.f32.xlu1 %v2741_v10  ;;  %v3725_v12 = vpop.f32.mrf.mxu1 }
 0x591   : > { %v5115_v45 = vpop.f32.mrf.mxu1 }
 0x592   : > { %v2744_v1 = vsel %vm1238_vm9, %v5115_v45, -inf }
 0x593   : > { %1258 = vadd.xlane.f32.xlu1 %v1257_v63  ;;  %2745 = vmax.xlane.f32.xlu0 %v2744_v1  ;;  %v3728_v4 = vpop.f32.mrf.mxu1 }
 0x597   : > { %1264 = vadd.xlane.f32.xlu1 %v1263_v35  ;;  %1261 = vadd.xlane.f32.xlu0 %v1260_v52 }
 0x5d8   : > { %v1665_v54 = vpop.xlane.xlu1 %1664 }
 0x5d9   : > { %v1672_v37 = vsub.f32 %v5042_v62, %v1665_v54 }
 0x5db   : > { %v1675_v51 = vmul.f32 1.442695, %v1672_v37 }
 0x5dc   : > { %v1668_v31 = vpop.xlane.xlu0 %1667 }
 0x5dd   : > { %3920 = vpow2.f32 %v1675_v51  ;;  %v1673_v7 = vsub.f32 %v5046_v2, %v1668_v31 }
 0x5df   : > { %v1677_v33 = vmul.f32 1.442695, %v1673_v7 }
 0x5e0   : > { %v1671_v29 = vpop.xlane.xlu1 %1670 }
 0x5e1   : > { %3922 = vpow2.f32 %v1677_v33  ;;  %v1674_v14 = vsub.f32 %v5050_v25, %v1671_v29 }
 0x5e3   : > { %v1679_v30 = vmul.f32 1.442695, %v1674_v14 }
 0x5e4   : > { %v1880_v56 = vpop.xlane.xlu0 %1879 }
 0x5e5   : > { %3924 = vpow2.f32 %v1679_v30  ;;  %v1887_v23 = vsub.f32 %v5054_v36, %v1880_v56 }
 0x5e7   : > { %v1890_v10 = vmul.f32 1.442695, %v1887_v23 }
 0x5e8   : > { %v1883_v12 = vpop.xlane.xlu1 %1882 }
 0x5e9   : > { %3926 = vpow2.f32 %v1890_v10  ;;  %v1888_v62 = vsub.f32 %v5058_v21, %v1883_v12 }
 0x5ea   : > { %v5134_v63 = vpop.eup %3920 }
 0x5eb   : > { %v1892_v1 = vmul.f32 1.442695, %v1888_v62  ;;  %v1681_v2 = vsel %vm1238_vm9, %v5134_v63, 0.0 }
 0x5ec   : > { %v1886_v4 = vpop.xlane.xlu0 %1885  ;;  %1682 = vadd.xlane.f32.xlu0 %v1681_v2 }
 0x5ed   : > { %3928 = vpow2.f32 %v1892_v1  ;;  %v1889_v25 = vsub.f32 %v5062_v20, %v1886_v4 }
 0x5ee   : > { %v5139_v35 = vpop.eup %3922 }
 0x5ef   : > { %v1894_v52 = vmul.f32 1.442695, %v1889_v25  ;;  %v1684_v36 = vsel %vm1238_vm9, %v5139_v35, 0.0 }
 0x5f0   : > { %1685 = vadd.xlane.f32.xlu1 %v1684_v36  ;;  %v2095_v54 = vpop.xlane.xlu1 %2094 }
 0x5f1   : > { %3930 = vpow2.f32 %v1894_v52  ;;  %v2102_v21 = vsub.f32 %v5066_v32, %v2095_v54 }
 0x5f2   : > { %v5144_v37 = vpop.eup %3924 }
 0x5f3   : > { %v2105_v51 = vmul.f32 1.442695, %v2102_v21  ;;  %v1687_v31 = vsel %vm1238_vm9, %v5144_v37, 0.0 }
 0x5f4   : > { %v2098_v7 = vpop.xlane.xlu0 %2097  ;;  %1688 = vadd.xlane.f32.xlu0 %v1687_v31 }
 0x5f5   : > { %3932 = vpow2.f32 %v2105_v51  ;;  %v2103_v20 = vsub.f32 %v5070_v15, %v2098_v7 }
 0x5f6   : > { %v5149_v33 = vpop.eup %3926 }
 0x5f7   : > { %v2107_v29 = vmul.f32 1.442695, %v2103_v20  ;;  %v1896_v14 = vsel %vm1238_vm9, %v5149_v33, 0.0 }
 0x5f8   : > { %1897 = vadd.xlane.f32.xlu1 %v1896_v14  ;;  %v2101_v30 = vpop.xlane.xlu1 %2100 }
 0x5f9   : > { %3934 = vpow2.f32 %v2107_v29  ;;  %v2104_v32 = vsub.f32 %v5074_v38, %v2101_v30 }
 0x5fa   : > { %v5154_v56 = vpop.eup %3928 }
 0x5fb   : > { %v2109_v23 = vmul.f32 1.442695, %v2104_v32  ;;  %v1899_v10 = vsel %vm1238_vm9, %v5154_v56, 0.0 }
 0x5fc   : > { %v2310_v12 = vpop.xlane.xlu0 %2309  ;;  %1900 = vadd.xlane.f32.xlu0 %v1899_v10 }
 0x5fd   : > { %3936 = vpow2.f32 %v2109_v23  ;;  %v2317_v15 = vsub.f32 %v5078_v27, %v2310_v12 }
 0x5fe   : > { %v5159_v62 = vpop.eup %3930 }
 0x5ff   : > { %v2320_v1 = vmul.f32 1.442695, %v2317_v15  ;;  %v1902_v2 = vsel %vm1238_vm9, %v5159_v62, 0.0 }
 0x600   : > { %1903 = vadd.xlane.f32.xlu1 %v1902_v2  ;;  %v2313_v4 = vpop.xlane.xlu1 %2312 }
 0x601   : > { %3938 = vpow2.f32 %v2320_v1  ;;  %v2318_v38 = vsub.f32 %v5082_v11, %v2313_v4 }
 0x602   : > { %v5164_v25 = vpop.eup %3932 }
 0x603   : > { %v2322_v52 = vmul.f32 1.442695, %v2318_v38  ;;  %v2111_v36 = vsel %vm1238_vm9, %v5164_v25, 0.0 }
 0x604   : > { %v2316_v54 = vpop.xlane.xlu0 %2315  ;;  %2112 = vadd.xlane.f32.xlu0 %v2111_v36 }
 0x605   : > { %3940 = vpow2.f32 %v2322_v52  ;;  %v2319_v27 = vsub.f32 %v5086_v47, %v2316_v54 }
 0x606   : > { %v5169_v21 = vpop.eup %3934 }
 0x607   : > { %v2324_v51 = vmul.f32 1.442695, %v2319_v27  ;;  %v2114_v31 = vsel %vm1238_vm9, %v5169_v21, 0.0 }
 0x608   : > { %2115 = vadd.xlane.f32.xlu1 %v2114_v31  ;;  %v2525_v7 = vpop.xlane.xlu1 %2524 }
 0x609   : > { %3942 = vpow2.f32 %v2324_v51  ;;  %v2532_v11 = vsub.f32 %v5092_v26, %v2525_v7 }
 0x60a   : > { %v5174_v20 = vpop.eup %3936 }
 0x60b   : > { %v2535_v29 = vmul.f32 1.442695, %v2532_v11  ;;  %v2117_v14 = vsel %vm1238_vm9, %v5174_v20, 0.0 }
 0x60c   : > { %v2528_v30 = vpop.xlane.xlu0 %2527  ;;  %2118 = vadd.xlane.f32.xlu0 %v2117_v14 }
 0x60d   : > { %3944 = vpow2.f32 %v2535_v29  ;;  %v2533_v47 = vsub.f32 %v5097_v28, %v2528_v30 }
 0x60e   : > { %v5179_v32 = vpop.eup %3938 }
 0x60f   : > { %v2537_v23 = vmul.f32 1.442695, %v2533_v47  ;;  %v2326_v10 = vsel %vm1238_vm9, %v5179_v32, 0.0 }
 0x610   : > { %2327 = vadd.xlane.f32.xlu1 %v2326_v10  ;;  %v2531_v12 = vpop.xlane.xlu1 %2530 }
 0x611   : > { %3946 = vpow2.f32 %v2537_v23  ;;  %v2534_v26 = vsub.f32 %v5101_v53, %v2531_v12 }
 0x612   : > { %v5184_v15 = vpop.eup %3940 }
 0x613   : > { %v2539_v1 = vmul.f32 1.442695, %v2534_v26  ;;  %v2329_v2 = vsel %vm1238_vm9, %v5184_v15, 0.0 }
 0x614   : > { %v2740_v4 = vpop.xlane.xlu0 %2739  ;;  %2330 = vadd.xlane.f32.xlu0 %v2329_v2 }
 0x615   : > { %3948 = vpow2.f32 %v2539_v1  ;;  %v2747_v28 = vsub.f32 %v5105_v34, %v2740_v4 }
 0x616   : > { %v5189_v38 = vpop.eup %3942 }
 0x617   : > { %v2750_v52 = vmul.f32 1.442695, %v2747_v28  ;;  %v2332_v36 = vsel %vm1238_vm9, %v5189_v38, 0.0 }
 0x618   : > { %2333 = vadd.xlane.f32.xlu1 %v2332_v36  ;;  %v2743_v54 = vpop.xlane.xlu1 %2742 }
 0x619   : > { %3950 = vpow2.f32 %v2750_v52  ;;  %v2748_v53 = vsub.f32 %v5109_v8, %v2743_v54 }
 0x61a   : > { %v5194_v27 = vpop.eup %3944 }
 0x61b   : > { %v2752_v51 = vmul.f32 1.442695, %v2748_v53  ;;  %v2541_v31 = vsel %vm1238_vm9, %v5194_v27, 0.0 }
 0x61c   : > { %v2746_v7 = vpop.xlane.xlu0 %2745  ;;  %2542 = vadd.xlane.f32.xlu0 %v2541_v31  ;;  %v1259_v34 = vpop.xlane.xlu1 %1258 }
 0x61d   : > { %3952 = vpow2.f32 %v2752_v51  ;;  %v2749_v11 = vsub.f32 %v5115_v45, %v2746_v7 }
 0x61e   : > { %v5199_v29 = vpop.eup %3946  ;;  %3954 = vrcp.f32 %v1259_v34 }
 0x61f   : > { %v2754_v14 = vmul.f32 1.442695, %v2749_v11  ;;  %v2544_v30 = vsel %vm1238_vm9, %v5199_v29, 0.0 }
 0x620   : > { %2545 = vadd.xlane.f32.xlu1 %v2544_v30  ;;  %v1262_v8 = vpop.xlane.xlu0 %1261  ;;  %v1265_v47 = vpop.xlane.xlu1 %1264 }
 0x621   : > { %3956 = vpow2.f32 %v2754_v14 }
 0x622   : > { %v5203_v23 = vpop.eup %3948  ;;  %3958 = vrcp.f32 %v1262_v8 }
 0x623   : > { %v2547_v10 = vsel %vm1238_vm9, %v5203_v23, 0.0  ;;  %3960 = vrcp.f32 %v1265_v47 }
 0x624   : > { %2548 = vadd.xlane.f32.xlu0 %v2547_v10 }
 0x626   : > { %v5207_v45 = vpop.eup %3950 }
 0x627   : > { %v2756_v12 = vsel %vm1238_vm9, %v5207_v45, 0.0 }
 0x628   : > { %2757 = vadd.xlane.f32.xlu1 %v2756_v12 }
 0x62a   : > { %v5211_v26 = vpop.eup %3952 }
 0x62b   : > { %v3955_v1 = vpop.eup %3954  ;;  %v2759_v2 = vsel %vm1238_vm9, %v5211_v26, 0.0 }
 0x62c   : > { %v1269_v4 = vmul.f32 %v3955_v1, %v5113_v6  ;;  %2760 = vadd.xlane.f32.xlu0 %v2759_v2 }
 0x62e   : > { %v5216_v28 = vpop.eup %3956  ;;  %3556 = vmatmul.mubr.msk.f32.vlgmr.msra.gmra.mxu0 %vm1238_vm9, %v1269_v4 }
 0x62f   : > { %v3959_v52 = vpop.eup %3958  ;;  %3580 = vmatpush3.msra.mxu0 %v4848_v16  ;;  %v2762_v36 = vsel %vm1238_vm9, %v5216_v28, 0.0  ;;  %3558 = vmatprep.mubr.msk.f32.mxu0 %vm4313_vm0, %v4312_v0 }
 0x630   : > { %3581 = vmatprep.subr.mxu0 %v4312_v0  ;;  %2763 = vadd.xlane.f32.xlu1 %v2762_v36  ;;  %v1270_v54 = vmul.f32 %v3959_v52, %v5123_v3  ;;  %v3961_v6 = vpop.eup %3960 }
 0x631   : > { %3582 = vmatpush3.msra.mxu0 %v4812_v57  ;;  %v1271_v16 = vmul.f32 %v3961_v6, %v5117_v49 }
 0x632   : > { %3583 = vmatprep.subr.mxu0 %v4312_v0  ;;  %3559 = vmatmul.mubr.msk.f32.gmra.mxu0 %vm1238_vm9, %v1270_v54 }
 0x633   : > { %3584 = vmatpush3.msra.mxu0 %v4772_v39  ;;  %3561 = vmatprep.mubr.msk.f32.mxu0 %vm4313_vm0, %v4312_v0 }
 0x634   : > { %3609 = vmatprep.subr.mxu0 %v4312_v0 }
 0x636   : > { %3562 = vmatmul.mubr.msk.f32.gmra.mxu0 %vm1238_vm9, %v1271_v16 }
 0x637   : > { %3585 = vmatprep.mubr.msk.f32.mxu0 %vm4313_vm0, %v4312_v0 }
 0x675   : > { %v1683_v3 = vpop.xlane.xlu0 %1682 }
 0x676   : > { %3962 = vrcp.f32 %v1683_v3  ;;  %v2878_v3 = vld [vmem:[#allocation14 + $0x78] sm:$0xff] }
 0x677   : > { %3745 = vmatpush3.msra.mxu1 %v2878_v3 }
 0x678   : > { %3746 = vmatprep.subr.mxu1 %v4312_v0 }
 0x679   : > { %v1686_v57 = vpop.xlane.xlu1 %1685 }
 0x67a   : > { %3964 = vrcp.f32 %v1686_v57  ;;  %v2876_v57 = vld [vmem:[#allocation14 + $0x68] sm:$0xff] }
 0x67d   : > { %v1689_v53 = vpop.xlane.xlu0 %1688 }
 0x67e   : > { %3966 = vrcp.f32 %v1689_v53 }
 0x681   : > { %v1898_v51 = vpop.xlane.xlu1 %1897 }
 0x682   : > { %3968 = vrcp.f32 %v1898_v51 }
 0x683   : > { %v3963_v39 = vpop.eup %3962 }
 0x684   : > { %v1693_v31 = vmul.f32 %v3963_v39, %v5134_v63  ;;  %v2873_v39 = vld [vmem:[#allocation14 + $0x50] sm:$0xff] }
 0x685   : > { %v1901_v7 = vpop.xlane.xlu0 %1900 }
 0x686   : > { %3970 = vrcp.f32 %v1901_v7  ;;  %3586 = vmatmul.mubr.msk.f32.vlgmr.msra.gmra.mxu0 %vm1238_vm9, %v1693_v31  ;;  %v2872_v7 = vld [vmem:[#allocation14 + $0x48] sm:$0xff] }
 0x687   : > { %v3965_v49 = vpop.eup %3964  ;;  %3610 = vmatpush3.msra.mxu0 %v4850_v18  ;;  %3588 = vmatprep.mubr.msk.f32.mxu0 %vm4313_vm0, %v4312_v0 }
 0x688   : > { %3611 = vmatprep.subr.mxu0 %v4312_v0  ;;  %v1694_v34 = vmul.f32 %v3965_v49, %v5139_v35 }
 0x689   : > { %3612 = vmatpush3.msra.mxu0 %v4815_v58  ;;  %v1904_v11 = vpop.xlane.xlu1 %1903 }
 0x68a   : > { %3613 = vmatprep.subr.mxu0 %v4312_v0  ;;  %3972 = vrcp.f32 %v1904_v11  ;;  %3589 = vmatmul.mubr.msk.f32.gmra.mxu0 %vm1238_vm9, %v1694_v34  ;;  %v2871_v34 = vld [vmem:[#allocation14 + $0x40] sm:$0xff] }
 0x68b   : > { %v3967_v63 = vpop.eup %3966  ;;  %3614 = vmatpush3.msra.mxu0 %v4775_v40  ;;  %3591 = vmatprep.mubr.msk.f32.mxu0 %vm4313_vm0, %v4312_v0 }
 0x68c   : > { %v1695_v18 = vmul.f32 %v3967_v63, %v5144_v37  ;;  %3639 = vmatprep.subr.mxu0 %v4312_v0  ;;  %v2870_v63 = vld [vmem:[#allocation14 + $0x38] sm:$0xff] }
 0x68d   : > { %v2113_v14 = vpop.xlane.xlu0 %2112 }
 0x68e   : > { %3974 = vrcp.f32 %v2113_v14  ;;  %3592 = vmatmul.mubr.msk.f32.gmra.mxu0 %vm1238_vm9, %v1695_v18  ;;  %v2869_v14 = vld [vmem:[#allocation14 + $0x30] sm:$0xff] }
 0x68f   : > { %v3969_v58 = vpop.eup %3968  ;;  %3615 = vmatprep.mubr.msk.f32.mxu0 %vm4313_vm0, %v4312_v0 }
 0x690   : > { %v1908_v35 = vmul.f32 %v3969_v58, %v5149_v33  ;;  %v2868_v58 = vld [vmem:[#allocation14 + $0x28] sm:$0xff] }
 0x691   : > { %v2116_v30 = vpop.xlane.xlu1 %2115 }
 0x692   : > { %3976 = vrcp.f32 %v2116_v30  ;;  %3616 = vmatmul.mubr.msk.f32.vlgmr.msra.gmra.mxu0 %vm1238_vm9, %v1908_v35  ;;  %v2867_v35 = vld [vmem:[#allocation14 + $0x20] sm:$0xff]  ;;  %v2866_v30 = vld [vmem:[#allocation14 + $0x18] sm:$0xff] }
 0x693   : > { %v3971_v40 = vpop.eup %3970  ;;  %3640 = vmatpush3.msra.mxu0 %v4852_v19  ;;  %3618 = vmatprep.mubr.msk.f32.mxu0 %vm4313_vm0, %v4312_v0 }
 0x694   : > { %3641 = vmatprep.subr.mxu0 %v4312_v0  ;;  %v1909_v37 = vmul.f32 %v3971_v40, %v5154_v56  ;;  %v2865_v40 = vld [vmem:[#allocation14 + $0x10] sm:$0xff] }
 0x695   : > { %3642 = vmatpush3.msra.mxu0 %v4818_v59  ;;  %v2119_v8 = vpop.xlane.xlu0 %2118 }
 0x696   : > { %3978 = vrcp.f32 %v2119_v8  ;;  %3643 = vmatprep.subr.mxu0 %v4312_v0  ;;  %3619 = vmatmul.mubr.msk.f32.gmra.mxu0 %vm1238_vm9, %v1909_v37  ;;  %v2864_v37 = vld [vmem:[#allocation14 + $0x8] sm:$0xff]  ;;  %v2863_v8 = vld [vmem:[#allocation14] sm:$0xff] }
 0x697   : > { %v3973_v33 = vpop.eup %3972  ;;  %3644 = vmatpush3.msra.mxu0 %v4778_v41  ;;  %3621 = vmatprep.mubr.msk.f32.mxu0 %vm4313_vm0, %v4312_v0 }
 0x698   : > { %v1910_v19 = vmul.f32 %v3973_v33, %v5159_v62  ;;  %3669 = vmatprep.subr.mxu0 %v4312_v0 }
 0x699   : > { %v2328_v47 = vpop.xlane.xlu1 %2327 }
 0x69a   : > { %3980 = vrcp.f32 %v2328_v47  ;;  %3622 = vmatmul.mubr.msk.f32.gmra.mxu0 %vm1238_vm9, %v1910_v19 }
 0x69b   : > { %v3975_v59 = vpop.eup %3974  ;;  %3645 = vmatprep.mubr.msk.f32.mxu0 %vm4313_vm0, %v4312_v0 }
 0x69c   : > { %v2123_v56 = vmul.f32 %v3975_v59, %v5164_v25 }
 0x69d   : > { %v2331_v10 = vpop.xlane.xlu0 %2330 }
 0x69e   : > { %3982 = vrcp.f32 %v2331_v10  ;;  %3646 = vmatmul.mubr.msk.f32.vlgmr.msra.gmra.mxu0 %vm1238_vm9, %v2123_v56 }
 0x69f   : > { %v3977_v41 = vpop.eup %3976  ;;  %3670 = vmatpush3.msra.mxu0 %v4854_v22  ;;  %3648 = vmatprep.mubr.msk.f32.mxu0 %vm4313_vm0, %v4312_v0 }
 0x6a0   : > { %3671 = vmatprep.subr.mxu0 %v4312_v0  ;;  %v2124_v62 = vmul.f32 %v3977_v41, %v5169_v21 }
 0x6a1   : > { %3672 = vmatpush3.msra.mxu0 %v4821_v60  ;;  %v2334_v12 = vpop.xlane.xlu1 %2333 }
 0x6a2   : > { %3673 = vmatprep.subr.mxu0 %v4312_v0  ;;  %3984 = vrcp.f32 %v2334_v12  ;;  %3649 = vmatmul.mubr.msk.f32.gmra.mxu0 %vm1238_vm9, %v2124_v62 }
 0x6a3   : > { %v3979_v25 = vpop.eup %3978  ;;  %3674 = vmatpush3.msra.mxu0 %v4781_v42  ;;  %3651 = vmatprep.mubr.msk.f32.mxu0 %vm4313_vm0, %v4312_v0 }
 0x6a4   : > { %v2125_v22 = vmul.f32 %v3979_v25, %v5174_v20  ;;  %3699 = vmatprep.subr.mxu0 %v4312_v0 }
 0x6a5   : > { %v2543_v1 = vpop.xlane.xlu0 %2542 }
 0x6a6   : > { %3986 = vrcp.f32 %v2543_v1  ;;  %3652 = vmatmul.mubr.msk.f32.gmra.mxu0 %vm1238_vm9, %v2125_v22 }
 0x6a7   : > { %v3981_v60 = vpop.eup %3980  ;;  %3675 = vmatprep.mubr.msk.f32.mxu0 %vm4313_vm0, %v4312_v0 }
 0x6a8   : > { %v2338_v21 = vmul.f32 %v3981_v60, %v5179_v32 }
 0x6a9   : > { %v2546_v2 = vpop.xlane.xlu1 %2545 }
 0x6aa   : > { %3988 = vrcp.f32 %v2546_v2  ;;  %3676 = vmatmul.mubr.msk.f32.vlgmr.msra.gmra.mxu0 %vm1238_vm9, %v2338_v21 }
 0x6ab   : > { %v3983_v42 = vpop.eup %3982  ;;  %3700 = vmatpush3.msra.mxu0 %v4856_v24  ;;  %3678 = vmatprep.mubr.msk.f32.mxu0 %vm4313_vm0, %v4312_v0 }
 0x6ac   : > { %3701 = vmatprep.subr.mxu0 %v4312_v0  ;;  %v2339_v20 = vmul.f32 %v3983_v42, %v5184_v15 }
 0x6ad   : > { %3702 = vmatpush3.msra.mxu0 %v4824_v61  ;;  %v2549_v4 = vpop.xlane.xlu0 %2548 }
 0x6ae   : > { %3990 = vrcp.f32 %v2549_v4  ;;  %3703 = vmatprep.subr.mxu0 %v4312_v0  ;;  %3679 = vmatmul.mubr.msk.f32.gmra.mxu0 %vm1238_vm9, %v2339_v20 }
 0x6af   : > { %v3985_v32 = vpop.eup %3984  ;;  %3704 = vmatpush3.msra.mxu0 %v4784_v43  ;;  %3681 = vmatprep.mubr.msk.f32.mxu0 %vm4313_vm0, %v4312_v0 }
 0x6b0   : > { %v2340_v24 = vmul.f32 %v3985_v32, %v5189_v38  ;;  %3729 = vmatprep.subr.mxu0 %v4312_v0 }
 0x6b1   : > { %v2758_v52 = vpop.xlane.xlu1 %2757 }
 0x6b2   : > { %3992 = vrcp.f32 %v2758_v52  ;;  %3682 = vmatmul.mubr.msk.f32.gmra.mxu0 %vm1238_vm9, %v2340_v24 }
 0x6b3   : > { %v3987_v61 = vpop.eup %3986  ;;  %3705 = vmatprep.mubr.msk.f32.mxu0 %vm4313_vm0, %v4312_v0 }
 0x6b4   : > { %v2553_v15 = vmul.f32 %v3987_v61, %v5194_v27 }
 0x6b5   : > { %v2761_v36 = vpop.xlane.xlu0 %2760 }
 0x6b6   : > { %3994 = vrcp.f32 %v2761_v36  ;;  %3706 = vmatmul.mubr.msk.f32.vlgmr.msra.gmra.mxu0 %vm1238_vm9, %v2553_v15 }
 0x6b7   : > { %v3989_v43 = vpop.eup %3988  ;;  %3730 = vmatpush3.msra.mxu0 %v4870_v55  ;;  %3708 = vmatprep.mubr.msk.f32.mxu0 %vm4313_vm0, %v4312_v0 }
 0x6b8   : > { %3731 = vmatprep.subr.mxu0 %v4312_v0  ;;  %v2554_v38 = vmul.f32 %v3989_v43, %v5199_v29 }
 0x6b9   : > { %3732 = vmatpush3.msra.mxu0 %v4841_v5  ;;  %v2764_v54 = vpop.xlane.xlu1 %2763 }
 0x6ba   : > { %3733 = vmatprep.subr.mxu0 %v4312_v0  ;;  %3996 = vrcp.f32 %v2764_v54  ;;  %3709 = vmatmul.mubr.msk.f32.gmra.mxu0 %vm1238_vm9, %v2554_v38 }
 0x6bb   : > { %v3991_v27 = vpop.eup %3990  ;;  %3734 = vmatpush3.msra.mxu0 %v4805_v50  ;;  %3711 = vmatprep.mubr.msk.f32.mxu0 %vm4313_vm0, %v4312_v0 }
 0x6bc   : > { %v2555_v55 = vmul.f32 %v3991_v27, %v5203_v23 }
 0x6be   : > { %3712 = vmatmul.mubr.msk.f32.gmra.mxu0 %vm1238_vm9, %v2555_v55 }
 0x6bf   : > { %v3993_v6 = vpop.eup %3992  ;;  %3735 = vmatprep.mubr.msk.f32.mxu0 %vm4313_vm0, %v4312_v0 }
 0x6c0   : > { %v2768_v5 = vmul.f32 %v3993_v6, %v5207_v45  ;;  %v2877_v45 = vld [vmem:[#allocation14 + $0x70] sm:$0xff] }
 0x6c1   : > { %3747 = vmatpush3.msra.mxu1 %v2877_v45 }
 0x6c2   : > { %3736 = vmatmul.mubr.msk.f32.vlgmr.msra.gmra.mxu0 %vm1238_vm9, %v2768_v5  ;;  %3748 = vmatprep.subr.mxu1 %v4312_v0 }
 0x6c3   : > { %v3995_v29 = vpop.eup %3994  ;;  %3738 = vmatprep.mubr.msk.f32.mxu0 %vm4313_vm0, %v4312_v0  ;;  %3749 = vmatpush3.msra.mxu1 %v2876_v57 }
 0x6c4   : > { %v2769_v50 = vmul.f32 %v3995_v29, %v5211_v26  ;;  %v2875_v26 = vld [vmem:[#allocation14 + $0x60] sm:$0xff]  ;;  %3750 = vmatprep.subr.mxu1 %v4312_v0 }
 0x6c5   : > { %3751 = vmatpush3.msra.mxu1 %v2875_v26 }
 0x6c6   : > { %3739 = vmatmul.mubr.msk.f32.gmra.mxu0 %vm1238_vm9, %v2769_v50  ;;  %3752 = vmatprep.subr.mxu1 %v4312_v0 }
 0x6c7   : > { %v3997_v16 = vpop.eup %3996  ;;  %3741 = vmatprep.mubr.msk.f32.mxu0 %vm4313_vm0, %v4312_v0 }
 0x6c8   : > { %v2770_v23 = vmul.f32 %v3997_v16, %v5216_v28  ;;  %v2874_v28 = vld [vmem:[#allocation14 + $0x58] sm:$0xff] }
 0x6c9   : > { %3753 = vmatpush3.msra.mxu1 %v2874_v28 }
 0x6ca   : > { %3742 = vmatmul.mubr.msk.f32.gmra.mxu0 %vm1238_vm9, %v2770_v23  ;;  %3754 = vmatprep.subr.mxu1 %v4312_v0 }
 0x6cb   : > { %3755 = vmatpush3.msra.mxu1 %v2873_v39 }
 0x6cc   : > { %3756 = vmatprep.subr.mxu1 %v4312_v0 }
 0x6cd   : > { %3757 = vmatpush3.msra.mxu1 %v2872_v7 }
 0x6ce   : > { %3758 = vmatprep.subr.mxu1 %v4312_v0 }
 0x6cf   : > { %3759 = vmatpush3.msra.mxu1 %v2871_v34 }
 0x6d0   : > { %3760 = vmatprep.subr.mxu1 %v4312_v0 }
 0x6d1   : > { %3761 = vmatpush3.msra.mxu1 %v2870_v63 }
 0x6d2   : > { %3762 = vmatprep.subr.mxu1 %v4312_v0 }
 0x6d3   : > { %3763 = vmatpush3.msra.mxu1 %v2869_v14 }
 0x6d4   : > { %3764 = vmatprep.subr.mxu1 %v4312_v0 }
 0x6d5   : > { %3765 = vmatpush3.msra.mxu1 %v2868_v58 }
 0x6d6   : > { %3766 = vmatprep.subr.mxu1 %v4312_v0 }
 0x6d7   : > { %3767 = vmatpush3.msra.mxu1 %v2867_v35 }
 0x6d8   : > { %3768 = vmatprep.subr.mxu1 %v4312_v0 }
 0x6d9   : > { %3769 = vmatpush3.msra.mxu1 %v2866_v30 }
 0x6da   : > { %3770 = vmatprep.subr.mxu1 %v4312_v0 }
 0x6db   : > { %3771 = vmatpush3.msra.mxu1 %v2865_v40  ;;  %v3257_v40 = vld [vmem:[%s5509_s5] ss:$0 sm:$0xff] }
 0x6dc   : > { %3772 = vmatprep.subr.mxu1 %v4312_v0 }
 0x6dd   : > { %3773 = vmatpush3.msra.mxu1 %v2864_v37 }
 0x6de   : > { %3774 = vmatprep.subr.mxu1 %v4312_v0 }
 0x6df   : > { %3775 = vmatpush3.msra.mxu1 %v2863_v8 }
 0x6ee   : > { %v5339_v53 = vpop.f32.mrf.mxu0 }
 0x6ef   : > { %v1560_v38 = vadd.f32 %v5339_v53, %v5036_v44 }
 0x6f0   : > { %v3557_v51 = vpop.f32.mrf.mxu0 }
 0x6f2   : > { %v5343_v31 = vpop.f32.mrf.mxu0 }
 0x6f3   : > { %v1565_v6 = vadd.f32 %v5343_v31, %v5038_v46 }
 0x6f4   : > { %v3560_v49 = vpop.f32.mrf.mxu0 }
 0x6f6   : > { %v1569_v11 = vpop.f32.mrf.mxu0 }
 0x6f7   : > { %v1570_v3 = vadd.f32 %v1569_v11, %v5040_v48 }
 0x6f8   : > { %v3563_v18 = vpop.f32.mrf.mxu0 }
 0x746   : > { %v1771_v33 = vpop.f32.mrf.mxu0 }
 0x747   : > { %v1785_v27 = vadd.f32 %v1771_v33, %v1560_v38 }
 0x748   : > { %v3587_v19 = vpop.f32.mrf.mxu0 }
 0x74a   : > { %v1776_v47 = vpop.f32.mrf.mxu0 }
 0x74b   : > { %v1786_v50 = vadd.f32 %v1776_v47, %v1565_v6 }
 0x74c   : > { %v3590_v59 = vpop.f32.mrf.mxu0 }
 0x74e   : > { %v1781_v56 = vpop.f32.mrf.mxu0 }
 0x74f   : > { %v1787_v28 = vadd.f32 %v1781_v56, %v1570_v3 }
 0x750   : > { %v3593_v10 = vpop.f32.mrf.mxu0 }
 0x752   : > { %v1986_v41 = vpop.f32.mrf.mxu0 }
 0x753   : > { %v2000_v5 = vadd.f32 %v1986_v41, %v1785_v27 }
 0x754   : > { %v3617_v62 = vpop.f32.mrf.mxu0 }
 0x756   : > { %v1991_v12 = vpop.f32.mrf.mxu0 }
 0x757   : > { %v2001_v45 = vadd.f32 %v1991_v12, %v1786_v50 }
 0x758   : > { %v3620_v25 = vpop.f32.mrf.mxu0 }
 0x75a   : > { %v1996_v22 = vpop.f32.mrf.mxu0 }
 0x75b   : > { %v2002_v53 = vadd.f32 %v1996_v22, %v1787_v28 }
 0x75c   : > { %v3623_v1 = vpop.f32.mrf.mxu0 }
 0x75e   : > { %v2201_v60 = vpop.f32.mrf.mxu0 }
 0x75f   : > { %v2215_v16 = vadd.f32 %v2201_v60, %v2000_v5  ;;  %v3259_v5 = vld [vmem:[%s5511_s25] ss:$0 sm:$0xff] }
 0x760   : > { %v3647_v21 = vpop.f32.mrf.mxu0 }
 0x762   : > { %v2206_v2 = vpop.f32.mrf.mxu0 }
 0x763   : > { %v2216_v51 = vadd.f32 %v2206_v2, %v2001_v45 }
 0x764   : > { %v3650_v42 = vpop.f32.mrf.mxu0 }
 0x766   : > { %v2211_v20 = vpop.f32.mrf.mxu0 }
 0x767   : > { %v2217_v63 = vadd.f32 %v2211_v20, %v2002_v53 }
 0x768   : > { %v3653_v4 = vpop.f32.mrf.mxu0 }
 0x76a   : > { %v2416_v32 = vpop.f32.mrf.mxu0 }
 0x76b   : > { %v2430_v57 = vadd.f32 %v2416_v32, %v2215_v16 }
 0x76c   : > { %v3677_v24 = vpop.f32.mrf.mxu0 }
 0x76e   : > { %v2421_v52 = vpop.f32.mrf.mxu0 }
 0x76f   : > { %v2431_v7 = vadd.f32 %v2421_v52, %v2216_v51 }
 0x770   : > { %v3680_v61 = vpop.f32.mrf.mxu0 }
 0x772   : > { %v2426_v15 = vpop.f32.mrf.mxu0 }
 0x773   : > { %v2432_v18 = vadd.f32 %v2426_v15, %v2217_v63 }
 0x774   : > { %v3683_v36 = vpop.f32.mrf.mxu0 }
 0x776   : > { %v2631_v43 = vpop.f32.mrf.mxu0 }
 0x777   : > { %v2645_v39 = vadd.f32 %v2631_v43, %v2430_v57 }
 0x778   : > { %v3707_v54 = vpop.f32.mrf.mxu0 }
 0x77a   : > { %v2636_v55 = vpop.f32.mrf.mxu0 }
 0x77b   : > { %v2646_v46 = vadd.f32 %v2636_v55, %v2431_v7  ;;  %v3258_v55 = vld [vmem:[%s5510_s18] ss:$0 sm:$0xff] }
 0x77c   : > { %v3710_v29 = vpop.f32.mrf.mxu0 }
 0x77e   : > { %v2641_v23 = vpop.f32.mrf.mxu0 }
 0x77f   : > { %v2647_v14 = vadd.f32 %v2641_v23, %v2432_v18 }
 0x780   : > { %v3713_v26 = vpop.f32.mrf.mxu0 }
 0x782   : > { %v2846_v44 = vpop.f32.mrf.mxu0 }
 0x783   : > { %v2860_v49 = vadd.f32 %v2846_v44, %v2645_v39 }
 0x784   : > { %v3737_v34 = vpop.f32.mrf.mxu0 }
 0x785   : > { %3777 = vmatmul.mubr.f32.vlgmr.msra.gmra.mxu1 %v2860_v49 }
 0x786   : > { %v2851_v31 = vpop.f32.mrf.mxu0  ;;  %3779 = vmatprep.mubr.msk.f32.mxu1 %vm4313_vm0, %v4312_v0 }
 0x787   : > { %v2861_v48 = vadd.f32 %v2851_v31, %v2646_v46 }
 0x788   : > { %v3740_v11 = vpop.f32.mrf.mxu0 }
 0x789   : > { %3780 = vmatmul.mubr.f32.gmra.mxu1 %v2861_v48 }
 0x78a   : > { %v2856_v58 = vpop.f32.mrf.mxu0  ;;  %3782 = vmatprep.mubr.msk.f32.mxu1 %vm4313_vm0, %v4312_v0 }
 0x78b   : > { %v2862_v35 = vadd.f32 %v2856_v58, %v2647_v14 }
 0x78c   : > { %v3743_v30 = vpop.f32.mrf.mxu0 }
 0x78d   : > { %3783 = vmatmul.mubr.f32.gmra.mxu1 %v2862_v35 }
 0x845   : > { %v2952_v37 = vpop.f32.mrf.mxu1 }
 0x846   : > { %v2953_v8 = vadd.f32 %v3257_v40, %v2952_v37 }
 0x847   : > { %v3778_v33 = vpop.f32.mrf.mxu1 }
 0x848   : > { %v2966_v19 = vadd.f32 %v2953_v8, %v4707_v9 }
 0x849   : > { %v2957_v47 = vpop.f32.mrf.mxu1 }
 0x84a   : > { %v2958_v59 = vadd.f32 %v3257_v40, %v2957_v47  ;;  %2969 = vadd.xlane.f32.xlu0 %v2966_v19 }
 0x84b   : > { %v3781_v56 = vpop.f32.mrf.mxu1 }
 0x84c   : > { %v2967_v10 = vadd.f32 %v2958_v59, %v4717_v13 }
 0x84d   : > { %v2962_v41 = vpop.f32.mrf.mxu1 }
 0x84e   : > { %v2963_v0 = vadd.f32 %v3257_v40, %v2962_v41  ;;  %2971 = vadd.xlane.f32.xlu1 %v2967_v10 }
 0x84f   : > { %v3784_v62 = vpop.f32.mrf.mxu1 }
 0x850   : > { %v2968_v12 = vadd.f32 %v2963_v0, %v4727_v17 }
 0x852   : > { %2973 = vadd.xlane.f32.xlu0 %v2968_v12 }
 0x8d3   : > { %v2970_v25 = vpop.xlane.xlu0 %2969 }
 0x8d4   : > { %v2976_v22 = vmul.f32 0.0078125, %v2970_v25 }
 0x8d6   : > { %v2979_v1 = vsub.f32 %v2966_v19, %v2976_v22 }
 0x8d7   : > { %v2972_v60 = vpop.xlane.xlu1 %2971 }
 0x8d8   : > { %v2977_v21 = vmul.f32 0.0078125, %v2972_v60  ;;  %v2982_v2 = vmul.f32 %v2979_v1, %v2979_v1 }
 0x8da   : > { %v2980_v9 = vsub.f32 %v2967_v10, %v2977_v21  ;;  %2985 = vadd.xlane.f32.xlu1 %v2982_v2 }
 0x8db   : > { %v2974_v42 = vpop.xlane.xlu0 %2973 }
 0x8dc   : > { %v2978_v20 = vmul.f32 0.0078125, %v2974_v42  ;;  %v2983_v4 = vmul.f32 %v2980_v9, %v2980_v9 }
 0x8de   : > { %v2981_v32 = vsub.f32 %v2968_v12, %v2978_v20  ;;  %2987 = vadd.xlane.f32.xlu0 %v2983_v4 }
 0x8e0   : > { %v2984_v13 = vmul.f32 %v2981_v32, %v2981_v32 }
 0x8e2   : > { %2989 = vadd.xlane.f32.xlu1 %v2984_v13 }
 0x963   : > { %v2986_v24 = vpop.xlane.xlu1 %2985 }
 0x964   : > { %v2991_v52 = vmul.f32 0.0078125, %v2986_v24 }
 0x966   : > { %v2994_v17 = vadd.f32 1e-05, %v2991_v52 }
 0x967   : > { %v2988_v61 = vpop.xlane.xlu0 %2987 }
 0x968   : > { %3998 = vrsqrt.f32 %v2994_v17  ;;  %v2992_v15 = vmul.f32 0.0078125, %v2988_v61 }
 0x96a   : > { %v2995_v36 = vadd.f32 1e-05, %v2992_v15 }
 0x96b   : > { %v2990_v43 = vpop.xlane.xlu1 %2989 }
 0x96c   : > { %4000 = vrsqrt.f32 %v2995_v36  ;;  %v2993_v38 = vmul.f32 0.0078125, %v2990_v43 }
 0x96e   : > { %v2996_v54 = vadd.f32 1e-05, %v2993_v38 }
 0x970   : > { %4002 = vrsqrt.f32 %v2996_v54 }
 0x975   : > { %v3999_v27 = vpop.eup %3998 }
 0x976   : > { %v3000_v6 = vmul.f32 %v3999_v27, %v2979_v1 }
 0x978   : > { %v3010_v29 = vmul.f32 %v3258_v55, %v3000_v6 }
 0x979   : > { %v4001_v50 = vpop.eup %4000 }
 0x97a   : > { %v3020_v16 = vadd.f32 %v3259_v5, %v3010_v29  ;;  %v3001_v23 = vmul.f32 %v4001_v50, %v2980_v9 }
 0x97c   : > { %v3011_v3 = vmul.f32 %v3258_v55, %v3001_v23  ;;  %3023 = vst [vmem:[%s653_s28] sm:$0xff] %v3020_v16 }
 0x97d   : > { %v4003_v45 = vpop.eup %4002 }
 0x97e   : > { %v3021_v57 = vadd.f32 %v3259_v5, %v3011_v3  ;;  %v3002_v26 = vmul.f32 %v4003_v45, %v2981_v32 }
 0x980   : > { %v3012_v28 = vmul.f32 %v3258_v55, %v3002_v26  ;;  %3024 = vst [vmem:[%s653_s28 + $0x8] sm:$0xff] %v3021_v57 }
 0x982   : > { %v3022_v51 = vadd.f32 %v3259_v5, %v3012_v28 }
 0x984   : > { %3025 = vst [vmem:[%s653_s28 + $0x10] sm:$0xff] %v3022_v51 }
 0x985   : > { %4231 = shalt.err (!%p4228_p5)
}
 0x986   : > { %s4232_s15 = scalar_lea.hbm %s5381_s14, 384  ;;  %s4236_s17 = scalar_lea.hbm %s5513_s23, 768 }
 0x987   : > { %p4233_p13 = scmp.ne.s32.totalorder %s5381_s14, %s4232_s15  ;;  %p4237_p12 = scmp.lt.s32.totalorder %s5381_s14, %s5513_s23 }
 0x988   : > { %p4238_p0 = scmp.lt.s32.totalorder %s4236_s17, %s4232_s15 }
 0x989   : > { %p4234_p10 = pnand %p4233_p13, %p5514_p9 }
 0x98a   : > { %p4239_p6 = por %p4238_p0, %p4237_p12 }
 0x98b   : > { %p4235_p11 = pneg %p4234_p10 }
 0x98d   : > { %p4240_p7 = pnand %p4239_p6, %p4235_p11 }
 0x98f   : > { %4243 = shalt.err (!%p4240_p7)
}
 0x990   : > { %s4315_s3 = smov 128   ;;  %s4316_s13 = smov 8  }
 0x991   : > { %3813 = dma.vmem_to_hbm [thread:$0]  (%p5514_p9), %s5383_s26, 384, %s5381_s14, %s3027_s7, %s4315_s3, %s4315_s3, %s4316_s13  }
 0x992 PF: > { %s5515_s25 = sld [smem:[#allocation23_spill]] }
 0x993   : > { %s5516_s28 = sld [smem:[#allocation28_spill]] }
 0x994   : > { %s5517_s29 = sld [smem:[#allocation24_spill]] }
 0x998   : > { %s3055_s16 = sand.u32 1, %s5515_s25  }
 0x999   : > { %p5518_p3 = scmp.ne.s32.totalorder %s5516_s28, 0  ;;  %s3056_s27 = scalar_lea.sflag [#allocation4], %s3055_s16 }
 0x99a   : > { %p5519_p2 = scmp.ge.s32.totalorder %s5517_s29, 2 }
 0x99c   : > { %p3842_p1 = pnand %p5519_p2, %p5518_p3 }
 0x99e   : > { %p3843_p4 = pneg %p3842_p1 }
 0x9a0   : > { %4281 = dma.done.wait (%p3843_p4), %s3056_s27, 384  }
 0x9a1   : > { %4283 = vsyncadd (%p3843_p4), %s3056_s27, 4294966912  ;;  %s5520_s21 = sld [smem:[#allocation25_spill]]  ;;  %s5522_s18 = smov %s4290_s19 }
 0x9a2   : > { %s5521_s10 = sld [smem:[#allocation26_spill]]  ;;  %s5523_s19 = smov %s4294_s20 }
 0x9a7   : > { %p34_p8 = scmp.ge.s32.totalorder %s5520_s21, 4  }
 0x9a8   : > { %s5524_s20 = smov %s5521_s10 }
 0x9a9   :  { %36 = sbr.rel (!%p34_p8) target bundleno = 21 (0x15), region = 169 }
 0x9ae   :  { %3061 = vsyncpa [#allocation3], 1 }
 0x9af   :  { %3063 = vsyncpa [#allocation3 + $0x1], 1 }
 0x9b0   :  { %3064 = vsyncpa [#allocation6], 1 }
 0x9b1   :  { %3066 = vsyncpa [#allocation6 + $0x1], 1 }
 0x9b2   :  { %3067 = vsyncpa [#allocation9], 1 }
 0x9b3   :  { %3068 = vsyncpa [#allocation12], 1 }
 0x9b4   :  { %3069 = vsyncpa [#allocation15], 1 }
 0x9b5   :  { %3070 = vsyncpa [#allocation4], 1 }
 0x9b6   :  { %3072 = vsyncpa [#allocation4 + $0x1], 1 }

</bundles_post_ra>
